<compile_context>
chip_gen: v7x
topology: tpu7x:2x2x1
jax: 0.10.0
libtpu: 0.0.40
codegen_flags: <defaults>
</compile_context>

<pallas_src>
import functools

import jax
import jax.numpy as jnp
import numpy as np
from jax import lax
from jax.experimental import pallas as pl
from jax.experimental.pallas import tpu as pltpu

EPS = 1e-5  # nn.BatchNorm2d default

_CP = pltpu.CompilerParams(
    dimension_semantics=("parallel",),          # batch grid axis -> shard across TCs
    # Per-step footprint here is a few hundred KB; re-derive for production shapes
    # per generation (<= ~48 MB on v7x, can go higher on v5e/v6e).
    vmem_limit_bytes=32 * 1024 * 1024,
)


# ----------------------------- in-kernel helpers ------------------------------

def _out_hw(h, w, k, stride, pad):
    return (h + 2 * pad - k) // stride + 1, (w + 2 * pad - k) // stride + 1


def _tap(xp, ih, iw, ho, wo, stride):
    """Shifted / strided (Ho, Wo, C) window of a padded (Hp, Wp, C) VMEM value."""
    c = xp.shape[2]
    if stride == 1:
        return lax.slice(xp, (ih, iw, 0), (ih + ho, iw + wo, c))
    return lax.slice(
        xp, (ih, iw, 0),
        (ih + (ho - 1) * stride + 1, iw + (wo - 1) * stride + 1, c),
        (stride, stride, 1))


# ------------------------------- fused kernel ---------------------------------

def _dbb_fused_kernel(x_ref, wa_ref, w1_ref, sh1_ref, w2_ref, sht_ref, o_ref,
                      xpad_ref, tpad_ref, *, k, stride, pad):
    """One batch image per grid step; all DBB branches fused.

    x_ref   : (1, H, W, Cin)       input block
    wa_ref  : (k*k, Cout, Cin)     origin + 1x1 + avg folded, BN-scaled, tap-major
    w1_ref  : (Cin, Cmid)          kxk-branch 1x1 (W + id), BN1-scaled
    sh1_ref : (1, Cmid)            kxk-branch BN1 shift (== pad value)
    w2_ref  : (k*k, Cout, Cmid)    kxk-branch kxk conv, BN2-scaled, tap-major
    sht_ref : (Cout, 1)            total output shift (all branch biases summed)
    o_ref   : (1, Cout, Ho*Wo)     lane-dense output block
    xpad_ref: (Hp, Wp, Cin)  VMEM  zero-padded input scratch
    tpad_ref: (Hp, Wp, Cmid) VMEM  BN1(0)-padded intermediate scratch
    """
    h, w, cin = x_ref.shape[1], x_ref.shape[2], x_ref.shape[3]
    cmid = w1_ref.shape[1]
    cout = wa_ref.shape[1]
    ho, wo = _out_hw(h, w, k, stride, pad)
    cdt = wa_ref.dtype                                  # matmul input dtype (f32 / bf16)

    x = x_ref[0]                                        # (H, W, Cin)

    # ---- zero-padded input: scratch fill + one interior store (no concats) ----
    xpad_ref[...] = jnp.zeros_like(xpad_ref)
    xpad_ref[pl.ds(pad, h), pl.ds(pad, w), :] = x
    xp = xpad_ref[...]

    # ---- branch A: origin kxk conv (+bias+BN) with dbb_1x1 and dbb_avg folded ----
    # Per-tap matmuls; dot_general contracts the last dims so the MXU emits
    # (Cout, Ho*Wo) directly -> no transpose, output written once at the end.
    acc = jnp.zeros((cout, ho * wo), jnp.float32)
    for t in range(k * k):
        ih, iw = t // k, t % k
        tap = _tap(xp, ih, iw, ho, wo, stride).reshape(ho * wo, cin)
        acc = acc + lax.dot_general(
            wa_ref[t], tap.astype(cdt),
            (((1,), (1,)), ((), ())), preferred_element_type=jnp.float32)

    # ---- branch B: dbb_kxk = 1x1 (W+id) conv (+BN1) -> BN1(0)-pad -> kxk conv (+BN2) ----
    sh1 = sh1_ref[...]                                   # (1, Cmid)
    t1 = lax.dot_general(
        x.reshape(h * w, cin).astype(cdt), w1_ref[...],
        (((1,), (0,)), ((), ())), preferred_element_type=jnp.float32) + sh1
    tpad_ref[...] = jnp.broadcast_to(sh1.reshape(1, 1, cmid), tpad_ref.shape)
    tpad_ref[pl.ds(pad, h), pl.ds(pad, w), :] = t1.reshape(h, w, cmid)
    tp = tpad_ref[...]
    for t in range(k * k):
        ih, iw = t // k, t % k
        tap = _tap(tp, ih, iw, ho, wo, stride).reshape(ho * wo, cmid)
        acc = acc + lax.dot_general(
            w2_ref[t], tap.astype(cdt),
            (((1,), (1,)), ((), ())), preferred_element_type=jnp.float32)

    # ---- single output write: all branch shifts pre-summed into sht ----
    o_ref[0] = (acc + sht_ref[...]).astype(o_ref.dtype)


def _run_fused(x_nhwc, wa, w1, sh1, w2, sht, k, stride, pad, ho, wo):
    n, h, w, cin = x_nhwc.shape
    cmid = w1.shape[1]
    cout = wa.shape[1]
    hwo = ho * wo
    hp, wp = h + 2 * pad, w + 2 * pad
    kern = functools.partial(_dbb_fused_kernel, k=k, stride=stride, pad=pad)
    return pl.pallas_call(
        kern,
        out_shape=jax.ShapeDtypeStruct((n, cout, hwo), jnp.float32),
        grid=(n,),
        in_specs=[
            pl.BlockSpec((1, h, w, cin), lambda i: (i, 0, 0, 0)),
            pl.BlockSpec((k * k, cout, cin), lambda i: (0, 0, 0)),
            pl.BlockSpec((cin, cmid), lambda i: (0, 0)),
            pl.BlockSpec((1, cmid), lambda i: (0, 0)),
            pl.BlockSpec((k * k, cout, cmid), lambda i: (0, 0, 0)),
            pl.BlockSpec((cout, 1), lambda i: (0, 0)),
        ],
        out_specs=pl.BlockSpec((1, cout, hwo), lambda i: (i, 0, 0)),
        scratch_shapes=[
            pltpu.VMEM((hp, wp, cin), jnp.float32),
            pltpu.VMEM((hp, wp, cmid), jnp.float32),
        ],
        compiler_params=_CP,
    )(x_nhwc, wa, w1, sh1, w2, sht)


# --------------------------- DiverseBranchBlock forward ------------------------

def bn_affine(bn, conv_bias=None):
    g, b, m, v = bn
    s = g / jnp.sqrt(v + EPS)
    sh = b - m * s
    if conv_bias is not None:
        sh = sh + conv_bias * s
    return s, sh


def _dbb_forward(x_nchw, P, k, stride, padding, groups, compute_dtype=jnp.float32):
    assert groups == 1                      # TODO(synk): grouped / depthwise path
    assert k % 2 == 1 and padding == k // 2
    n, cin, h, w = x_nchw.shape
    cout = P["origin_w"].shape[0]
    cmid = P["kxk1_w"].shape[0]
    ho, wo = _out_hw(h, w, k, stride, padding)

    x = jnp.transpose(x_nchw, (0, 2, 3, 1)).astype(jnp.float32)   # NHWC once

    # BN affines (eval-mode running stats, folded at trace time)
    s0, sh0 = bn_affine(P["origin_bn"], P["origin_b"])            # origin conv + BN
    s1, sh1x1 = bn_affine(P["b1x1_bn"])                           # dbb_1x1 BN
    s_a1, sh_a1 = bn_affine(P["avg1_bn"])                         # dbb_avg BN1
    s_a2, sh_a2 = bn_affine(P["avg2_bn"])                         # dbb_avg BN2
    s_k1, sh_k1 = bn_affine(P["kxk1_bn"])                         # dbb_kxk BN1
    s_k2, sh_k2 = bn_affine(P["kxk2_bn"])                         # dbb_kxk BN2

    # ---- branch A weights: origin kxk + 1x1 (centre tap) + avg (every tap), tap-major ----
    wa = jnp.transpose(P["origin_w"] * s0[:, None, None, None],
                       (2, 3, 0, 1)).reshape(k * k, cout, cin)
    wa = wa + (P["avg1_w"][:, :, 0, 0] * (s_a1 * s_a2 / (k * k))[:, None])[None]
    center = (k // 2) * k + (k // 2)
    wa = wa.at[center].add(P["b1x1_w"][:, :, 0, 0] * s1[:, None])

    # ---- branch B weights: 1x1 (W + id) stage and kxk stage, tap-major ----
    w1 = ((P["kxk1_w"][:, :, 0, 0] + jnp.eye(cin, dtype=jnp.float32))
          * s_k1[:, None]).T                                      # (Cin, Cmid)
    w2 = jnp.transpose(P["kxk2_w"] * s_k2[:, None, None, None],
                       (2, 3, 0, 1)).reshape(k * k, cout, cmid)

    # ---- one total output shift (all branch biases summed) ----
    sht = (sh0 + sh1x1 + (s_a2 * sh_a1 + sh_a2) + sh_k2).reshape(cout, 1)

    out = _run_fused(x,
                     wa.astype(compute_dtype),
                     w1.astype(compute_dtype),
                     sh_k1.reshape(1, cmid),
                     w2.astype(compute_dtype),
                     sht,
                     k, stride, padding, ho, wo)

    return out.reshape(n, cout, ho, wo)      # (Cout, Ho*Wo) blocks -> NCHW for free


dbb_forward = jax.jit(_dbb_forward, static_argnums=(2, 3, 4, 5, 6))


# ------------------------------ pure-JAX reference -----------------------------

def _ref_conv(x, w, b, stride, pad):
    y = lax.conv_general_dilated(x, w, (stride, stride), [(pad, pad), (pad, pad)],
                                 dimension_numbers=("NCHW", "OIHW", "NCHW"))
    if b is not None:
        y = y + b.reshape(1, -1, 1, 1)
    return y


def _ref_bn(x, bn):
    g, b, m, v = bn
    return (g.reshape(1, -1, 1, 1) * (x - m.reshape(1, -1, 1, 1))
            / jnp.sqrt(v.reshape(1, -1, 1, 1) + EPS) + b.reshape(1, -1, 1, 1))


def ref_forward(x, P, k, stride, padding):
    cin = x.shape[1]
    y0 = _ref_bn(_ref_conv(x, P["origin_w"], P["origin_b"], stride, padding), P["origin_bn"])
    y1 = _ref_bn(_ref_conv(x, P["b1x1_w"], None, stride, 0), P["b1x1_bn"])

    def pad_with_values(t, p, bn):
        g, b, m, v = bn
        padv = (b - m * g / jnp.sqrt(v + EPS)).reshape(1, -1, 1, 1)
        tp = jnp.pad(t, ((0, 0), (0, 0), (p, p), (p, p)))
        tp = tp.at[:, :, :p, :].set(padv)
        tp = tp.at[:, :, -p:, :].set(padv)
        tp = tp.at[:, :, :, :p].set(padv)
        tp = tp.at[:, :, :, -p:].set(padv)
        return tp

    a1 = _ref_bn(_ref_conv(x, P["avg1_w"], None, 1, 0), P["avg1_bn"])
    a1p = pad_with_values(a1, padding, P["avg1_bn"])
    avg = lax.reduce_window(a1p, 0.0, lax.add, (1, 1, k, k),
                            (1, 1, stride, stride), "VALID") / (k * k)
    y2 = _ref_bn(avg, P["avg2_bn"])

    kern = P["kxk1_w"] + jnp.eye(cin, dtype=jnp.float32)[:, :, None, None]
    k1 = _ref_bn(_ref_conv(x, kern, None, 1, 0), P["kxk1_bn"])
    k1p = pad_with_values(k1, padding, P["kxk1_bn"])
    y3 = _ref_bn(_ref_conv(k1p, P["kxk2_w"], None, stride, 0), P["kxk2_bn"])
    return y0 + y1 + y2 + y3


# ------------------------------------ main --------------------------------------

if __name__ == "__main__":
    N, Cin, Cout, H, W = 2, 4, 8, 16, 16
    K, STRIDE, PAD, GROUPS = 3, 1, 1, 1

    key = jax.random.PRNGKey(0)
    ks = list(jax.random.split(key, 32))

    def nrm(kk, shape, scale=0.1):
        return scale * jax.random.normal(kk, shape, jnp.float32)

    def bn_params(kk, c):
        k1, k2, k3, k4 = jax.random.split(kk, 4)
        g = 1.0 + 0.1 * jax.random.normal(k1, (c,), jnp.float32)
        b = 0.1 * jax.random.normal(k2, (c,), jnp.float32)
        m = 0.1 * jax.random.normal(k3, (c,), jnp.float32)
        v = 1.0 + 0.2 * jax.random.uniform(k4, (c,), jnp.float32)
        return (g, b, m, v)

    P = {
        "origin_w": nrm(ks[0], (Cout, Cin, K, K)),
        "origin_b": nrm(ks[1], (Cout,)),
        "origin_bn": bn_params(ks[2], Cout),
        "b1x1_w": nrm(ks[3], (Cout, Cin, 1, 1)),
        "b1x1_bn": bn_params(ks[4], Cout),
        "avg1_w": nrm(ks[5], (Cout, Cin, 1, 1)),
        "avg1_bn": bn_params(ks[6], Cout),
        "avg2_bn": bn_params(ks[7], Cout),
        "kxk1_w": nrm(ks[8], (Cin, Cin, 1, 1)),   # internal_channels = Cin (non-depthwise)
        "kxk1_bn": bn_params(ks[9], Cin),
        "kxk2_w": nrm(ks[10], (Cout, Cin, K, K)),
        "kxk2_bn": bn_params(ks[11], Cout),
    }

    x = jax.random.normal(ks[12], (N, Cin, H, W), jnp.float32)

    out = dbb_forward(x, P, K, STRIDE, PAD, GROUPS)
    out = jax.block_until_ready(out)

    ref = jax.block_until_ready(ref_forward(x, P, K, STRIDE, PAD))
    np.testing.assert_allclose(np.asarray(out), np.asarray(ref), rtol=1e-4, atol=1e-4)

    print("KERNEL_OK")
</pallas_src>

<mosaic_0001>
module attributes {stable_mosaic.version = 11 : i64} {
  func.func @_dbb_fused_kernel(%arg0: i32, %arg1: memref<1x16x16x4xf32, #tpu.memory_space<vmem>>, %arg2: memref<9x8x4xf32, #tpu.memory_space<vmem>>, %arg3: memref<4x4xf32, #tpu.memory_space<vmem>>, %arg4: memref<1x4xf32, #tpu.memory_space<vmem>>, %arg5: memref<9x8x4xf32, #tpu.memory_space<vmem>>, %arg6: memref<8x1xf32, #tpu.memory_space<vmem>>, %arg7: memref<1x8x256xf32, #tpu.memory_space<vmem>>, %arg8: memref<18x18x4xf32, #tpu.memory_space<vmem>>, %arg9: memref<18x18x4xf32, #tpu.memory_space<vmem>>) attributes {dimension_semantics = [#tpu.dimension_semantics<parallel>], iteration_bounds = array<i64: 2>, scalar_prefetch = 0 : i64, scratch_operands = 2 : i64, tpu.core_type = #tpu.core_type<tc>, window_params = [{transform_indices = @transform_0, window_bounds = array<i64: 1, 16, 16, 4>}, {pipeline_mode = #tpu.pipeline_mode<synchronous>, transform_indices = @transform_1, window_bounds = array<i64: 9, 8, 4>}, {pipeline_mode = #tpu.pipeline_mode<synchronous>, transform_indices = @transform_2, window_bounds = array<i64: 4, 4>}, {pipeline_mode = #tpu.pipeline_mode<synchronous>, transform_indices = @transform_3, window_bounds = array<i64: 1, 4>}, {pipeline_mode = #tpu.pipeline_mode<synchronous>, transform_indices = @transform_4, window_bounds = array<i64: 9, 8, 4>}, {pipeline_mode = #tpu.pipeline_mode<synchronous>, transform_indices = @transform_5, window_bounds = array<i64: 8, 1>}, {transform_indices = @transform_6, window_bounds = array<i64: 1, 8, 256>}]} {
    %c0 = arith.constant 0 : index
    %c0_0 = arith.constant 0 : index
    %c0_1 = arith.constant 0 : index
    %c0_2 = arith.constant 0 : index
    %0 = vector.load %arg1[%c0, %c0_0, %c0_1, %c0_2] : memref<1x16x16x4xf32, #tpu.memory_space<vmem>>, vector<1x16x16x4xf32>
    %1 = vector.shape_cast %0 : vector<1x16x16x4xf32> to vector<16x16x4xf32>
    %cst = arith.constant 0.000000e+00 : f32
    %2 = vector.broadcast %cst : f32 to vector<18x18x4xf32>
    %c0_3 = arith.constant 0 : index
    %c0_4 = arith.constant 0 : index
    %c0_5 = arith.constant 0 : index
    %3 = vector.load %arg8[%c0_3, %c0_4, %c0_5] : memref<18x18x4xf32, #tpu.memory_space<vmem>>, vector<18x18x4xf32>
    tpu.vector_store %arg8[%c0_3, %c0_4, %c0_5], %2 {strides = array<i32>} : memref<18x18x4xf32, #tpu.memory_space<vmem>>, vector<18x18x4xf32>,
    %c1 = arith.constant 1 : index
    %c1_6 = arith.constant 1 : index
    %c0_7 = arith.constant 0 : index
    %4 = vector.load %arg8[%c1, %c1_6, %c0_7] : memref<18x18x4xf32, #tpu.memory_space<vmem>>, vector<16x16x4xf32>
    tpu.vector_store %arg8[%c1, %c1_6, %c0_7], %1 {strides = array<i32>} : memref<18x18x4xf32, #tpu.memory_space<vmem>>, vector<16x16x4xf32>,
    %c0_8 = arith.constant 0 : index
    %c0_9 = arith.constant 0 : index
    %c0_10 = arith.constant 0 : index
    %5 = vector.load %arg8[%c0_8, %c0_9, %c0_10] : memref<18x18x4xf32, #tpu.memory_space<vmem>>, vector<18x18x4xf32>
    %cst_11 = arith.constant 0.000000e+00 : f32
    %6 = vector.broadcast %cst_11 : f32 to vector<8x256xf32>
    %7 = vector.extract_strided_slice %5 {offsets = [0, 0, 0], sizes = [16, 16, 4], strides = [1, 1, 1]} : vector<18x18x4xf32> to vector<16x16x4xf32>
    %8 = vector.shape_cast %7 : vector<16x16x4xf32> to vector<256x4xf32>
    %c0_12 = arith.constant 0 : index
    %c0_13 = arith.constant 0 : index
    %c0_14 = arith.constant 0 : index
    %9 = vector.load %arg2[%c0_12, %c0_13, %c0_14] : memref<9x8x4xf32, #tpu.memory_space<vmem>>, vector<1x8x4xf32>
    %10 = vector.shape_cast %9 : vector<1x8x4xf32> to vector<8x4xf32>
    %cst_15 = arith.constant dense<0.000000e+00> : vector<8x256xf32>
    %11 = tpu.matmul %10, %8, %cst_15 {dimension_numbers = #tpu.dot_dimension_numbers<[1], [1], [0], [0], [0, 0, 1, 0], [], []>} : vector<8x4xf32>, vector<256x4xf32>, vector<8x256xf32> -> vector<8x256xf32>
    %12 = arith.addf %6, %11 : vector<8x256xf32>
    %13 = vector.extract_strided_slice %5 {offsets = [0, 1, 0], sizes = [16, 16, 4], strides = [1, 1, 1]} : vector<18x18x4xf32> to vector<16x16x4xf32>
    %14 = vector.shape_cast %13 : vector<16x16x4xf32> to vector<256x4xf32>
    %c1_16 = arith.constant 1 : index
    %c0_17 = arith.constant 0 : index
    %c0_18 = arith.constant 0 : index
    %15 = vector.load %arg2[%c1_16, %c0_17, %c0_18] : memref<9x8x4xf32, #tpu.memory_space<vmem>>, vector<1x8x4xf32>
    %16 = vector.shape_cast %15 : vector<1x8x4xf32> to vector<8x4xf32>
    %cst_19 = arith.constant dense<0.000000e+00> : vector<8x256xf32>
    %17 = tpu.matmul %16, %14, %cst_19 {dimension_numbers = #tpu.dot_dimension_numbers<[1], [1], [0], [0], [0, 0, 1, 0], [], []>} : vector<8x4xf32>, vector<256x4xf32>, vector<8x256xf32> -> vector<8x256xf32>
    %18 = arith.addf %12, %17 : vector<8x256xf32>
    %19 = vector.extract_strided_slice %5 {offsets = [0, 2, 0], sizes = [16, 16, 4], strides = [1, 1, 1]} : vector<18x18x4xf32> to vector<16x16x4xf32>
    %20 = vector.shape_cast %19 : vector<16x16x4xf32> to vector<256x4xf32>
    %c2 = arith.constant 2 : index
    %c0_20 = arith.constant 0 : index
    %c0_21 = arith.constant 0 : index
    %21 = vector.load %arg2[%c2, %c0_20, %c0_21] : memref<9x8x4xf32, #tpu.memory_space<vmem>>, vector<1x8x4xf32>
    %22 = vector.shape_cast %21 : vector<1x8x4xf32> to vector<8x4xf32>
    %cst_22 = arith.constant dense<0.000000e+00> : vector<8x256xf32>
    %23 = tpu.matmul %22, %20, %cst_22 {dimension_numbers = #tpu.dot_dimension_numbers<[1], [1], [0], [0], [0, 0, 1, 0], [], []>} : vector<8x4xf32>, vector<256x4xf32>, vector<8x256xf32> -> vector<8x256xf32>
    %24 = arith.addf %18, %23 : vector<8x256xf32>
    %25 = vector.extract_strided_slice %5 {offsets = [1, 0, 0], sizes = [16, 16, 4], strides = [1, 1, 1]} : vector<18x18x4xf32> to vector<16x16x4xf32>
    %26 = vector.shape_cast %25 : vector<16x16x4xf32> to vector<256x4xf32>
    %c3 = arith.constant 3 : index
    %c0_23 = arith.constant 0 : index
    %c0_24 = arith.constant 0 : index
    %27 = vector.load %arg2[%c3, %c0_23, %c0_24] : memref<9x8x4xf32, #tpu.memory_space<vmem>>, vector<1x8x4xf32>
    %28 = vector.shape_cast %27 : vector<1x8x4xf32> to vector<8x4xf32>
    %cst_25 = arith.constant dense<0.000000e+00> : vector<8x256xf32>
    %29 = tpu.matmul %28, %26, %cst_25 {dimension_numbers = #tpu.dot_dimension_numbers<[1], [1], [0], [0], [0, 0, 1, 0], [], []>} : vector<8x4xf32>, vector<256x4xf32>, vector<8x256xf32> -> vector<8x256xf32>
    %30 = arith.addf %24, %29 : vector<8x256xf32>
    %31 = vector.extract_strided_slice %5 {offsets = [1, 1, 0], sizes = [16, 16, 4], strides = [1, 1, 1]} : vector<18x18x4xf32> to vector<16x16x4xf32>
    %32 = vector.shape_cast %31 : vector<16x16x4xf32> to vector<256x4xf32>
    %c4 = arith.constant 4 : index
    %c0_26 = arith.constant 0 : index
    %c0_27 = arith.constant 0 : index
    %33 = vector.load %arg2[%c4, %c0_26, %c0_27] : memref<9x8x4xf32, #tpu.memory_space<vmem>>, vector<1x8x4xf32>
    %34 = vector.shape_cast %33 : vector<1x8x4xf32> to vector<8x4xf32>
    %cst_28 = arith.constant dense<0.000000e+00> : vector<8x256xf32>
    %35 = tpu.matmul %34, %32, %cst_28 {dimension_numbers = #tpu.dot_dimension_numbers<[1], [1], [0], [0], [0, 0, 1, 0], [], []>} : vector<8x4xf32>, vector<256x4xf32>, vector<8x256xf32> -> vector<8x256xf32>
    %36 = arith.addf %30, %35 : vector<8x256xf32>
    %37 = vector.extract_strided_slice %5 {offsets = [1, 2, 0], sizes = [16, 16, 4], strides = [1, 1, 1]} : vector<18x18x4xf32> to vector<16x16x4xf32>
    %38 = vector.shape_cast %37 : vector<16x16x4xf32> to vector<256x4xf32>
    %c5 = arith.constant 5 : index
    %c0_29 = arith.constant 0 : index
    %c0_30 = arith.constant 0 : index
    %39 = vector.load %arg2[%c5, %c0_29, %c0_30] : memref<9x8x4xf32, #tpu.memory_space<vmem>>, vector<1x8x4xf32>
    %40 = vector.shape_cast %39 : vector<1x8x4xf32> to vector<8x4xf32>
    %cst_31 = arith.constant dense<0.000000e+00> : vector<8x256xf32>
    %41 = tpu.matmul %40, %38, %cst_31 {dimension_numbers = #tpu.dot_dimension_numbers<[1], [1], [0], [0], [0, 0, 1, 0], [], []>} : vector<8x4xf32>, vector<256x4xf32>, vector<8x256xf32> -> vector<8x256xf32>
    %42 = arith.addf %36, %41 : vector<8x256xf32>
    %43 = vector.extract_strided_slice %5 {offsets = [2, 0, 0], sizes = [16, 16, 4], strides = [1, 1, 1]} : vector<18x18x4xf32> to vector<16x16x4xf32>
    %44 = vector.shape_cast %43 : vector<16x16x4xf32> to vector<256x4xf32>
    %c6 = arith.constant 6 : index
    %c0_32 = arith.constant 0 : index
    %c0_33 = arith.constant 0 : index
    %45 = vector.load %arg2[%c6, %c0_32, %c0_33] : memref<9x8x4xf32, #tpu.memory_space<vmem>>, vector<1x8x4xf32>
    %46 = vector.shape_cast %45 : vector<1x8x4xf32> to vector<8x4xf32>
    %cst_34 = arith.constant dense<0.000000e+00> : vector<8x256xf32>
    %47 = tpu.matmul %46, %44, %cst_34 {dimension_numbers = #tpu.dot_dimension_numbers<[1], [1], [0], [0], [0, 0, 1, 0], [], []>} : vector<8x4xf32>, vector<256x4xf32>, vector<8x256xf32> -> vector<8x256xf32>
    %48 = arith.addf %42, %47 : vector<8x256xf32>
    %49 = vector.extract_strided_slice %5 {offsets = [2, 1, 0], sizes = [16, 16, 4], strides = [1, 1, 1]} : vector<18x18x4xf32> to vector<16x16x4xf32>
    %50 = vector.shape_cast %49 : vector<16x16x4xf32> to vector<256x4xf32>
    %c7 = arith.constant 7 : index
    %c0_35 = arith.constant 0 : index
    %c0_36 = arith.constant 0 : index
    %51 = vector.load %arg2[%c7, %c0_35, %c0_36] : memref<9x8x4xf32, #tpu.memory_space<vmem>>, vector<1x8x4xf32>
    %52 = vector.shape_cast %51 : vector<1x8x4xf32> to vector<8x4xf32>
    %cst_37 = arith.constant dense<0.000000e+00> : vector<8x256xf32>
    %53 = tpu.matmul %52, %50, %cst_37 {dimension_numbers = #tpu.dot_dimension_numbers<[1], [1], [0], [0], [0, 0, 1, 0], [], []>} : vector<8x4xf32>, vector<256x4xf32>, vector<8x256xf32> -> vector<8x256xf32>
    %54 = arith.addf %48, %53 : vector<8x256xf32>
    %55 = vector.extract_strided_slice %5 {offsets = [2, 2, 0], sizes = [16, 16, 4], strides = [1, 1, 1]} : vector<18x18x4xf32> to vector<16x16x4xf32>
    %56 = vector.shape_cast %55 : vector<16x16x4xf32> to vector<256x4xf32>
    %c8 = arith.constant 8 : index
    %c0_38 = arith.constant 0 : index
    %c0_39 = arith.constant 0 : index
    %57 = vector.load %arg2[%c8, %c0_38, %c0_39] : memref<9x8x4xf32, #tpu.memory_space<vmem>>, vector<1x8x4xf32>
    %58 = vector.shape_cast %57 : vector<1x8x4xf32> to vector<8x4xf32>
    %cst_40 = arith.constant dense<0.000000e+00> : vector<8x256xf32>
    %59 = tpu.matmul %58, %56, %cst_40 {dimension_numbers = #tpu.dot_dimension_numbers<[1], [1], [0], [0], [0, 0, 1, 0], [], []>} : vector<8x4xf32>, vector<256x4xf32>, vector<8x256xf32> -> vector<8x256xf32>
    %60 = arith.addf %54, %59 : vector<8x256xf32>
    %c0_41 = arith.constant 0 : index
    %c0_42 = arith.constant 0 : index
    %61 = vector.load %arg4[%c0_41, %c0_42] : memref<1x4xf32, #tpu.memory_space<vmem>>, vector<1x4xf32>
    %62 = vector.shape_cast %1 : vector<16x16x4xf32> to vector<256x4xf32>
    %c0_43 = arith.constant 0 : index
    %c0_44 = arith.constant 0 : index
    %63 = vector.load %arg3[%c0_43, %c0_44] : memref<4x4xf32, #tpu.memory_space<vmem>>, vector<4x4xf32>
    %cst_45 = arith.constant dense<0.000000e+00> : vector<256x4xf32>
    %64 = tpu.matmul %62, %63, %cst_45 {dimension_numbers = #tpu.dot_dimension_numbers<[1], [0], [0], [1], [0, 0, 1, 1], [], []>} : vector<256x4xf32>, vector<4x4xf32>, vector<256x4xf32> -> vector<256x4xf32>
    %65 = vector.broadcast %61 : vector<1x4xf32> to vector<256x4xf32>
    %66 = arith.addf %64, %65 : vector<256x4xf32>
    %67 = vector.shape_cast %61 : vector<1x4xf32> to vector<1x1x4xf32>
    %68 = vector.shape_cast %67 : vector<1x1x4xf32> to vector<1x1x4xf32>
    %69 = vector.broadcast %68 : vector<1x1x4xf32> to vector<18x18x4xf32>
    %c0_46 = arith.constant 0 : index
    %c0_47 = arith.constant 0 : index
    %c0_48 = arith.constant 0 : index
    %70 = vector.load %arg9[%c0_46, %c0_47, %c0_48] : memref<18x18x4xf32, #tpu.memory_space<vmem>>, vector<18x18x4xf32>
    tpu.vector_store %arg9[%c0_46, %c0_47, %c0_48], %69 {strides = array<i32>} : memref<18x18x4xf32, #tpu.memory_space<vmem>>, vector<18x18x4xf32>,
    %71 = vector.shape_cast %66 : vector<256x4xf32> to vector<16x16x4xf32>
    %c1_49 = arith.constant 1 : index
    %c1_50 = arith.constant 1 : index
    %c0_51 = arith.constant 0 : index
    %72 = vector.load %arg9[%c1_49, %c1_50, %c0_51] : memref<18x18x4xf32, #tpu.memory_space<vmem>>, vector<16x16x4xf32>
    tpu.vector_store %arg9[%c1_49, %c1_50, %c0_51], %71 {strides = array<i32>} : memref<18x18x4xf32, #tpu.memory_space<vmem>>, vector<16x16x4xf32>,
    %c0_52 = arith.constant 0 : index
    %c0_53 = arith.constant 0 : index
    %c0_54 = arith.constant 0 : index
    %73 = vector.load %arg9[%c0_52, %c0_53, %c0_54] : memref<18x18x4xf32, #tpu.memory_space<vmem>>, vector<18x18x4xf32>
    %74 = vector.extract_strided_slice %73 {offsets = [0, 0, 0], sizes = [16, 16, 4], strides = [1, 1, 1]} : vector<18x18x4xf32> to vector<16x16x4xf32>
    %75 = vector.shape_cast %74 : vector<16x16x4xf32> to vector<256x4xf32>
    %c0_55 = arith.constant 0 : index
    %c0_56 = arith.constant 0 : index
    %c0_57 = arith.constant 0 : index
    %76 = vector.load %arg5[%c0_55, %c0_56, %c0_57] : memref<9x8x4xf32, #tpu.memory_space<vmem>>, vector<1x8x4xf32>
    %77 = vector.shape_cast %76 : vector<1x8x4xf32> to vector<8x4xf32>
    %cst_58 = arith.constant dense<0.000000e+00> : vector<8x256xf32>
    %78 = tpu.matmul %77, %75, %cst_58 {dimension_numbers = #tpu.dot_dimension_numbers<[1], [1], [0], [0], [0, 0, 1, 0], [], []>} : vector<8x4xf32>, vector<256x4xf32>, vector<8x256xf32> -> vector<8x256xf32>
    %79 = arith.addf %60, %78 : vector<8x256xf32>
    %80 = vector.extract_strided_slice %73 {offsets = [0, 1, 0], sizes = [16, 16, 4], strides = [1, 1, 1]} : vector<18x18x4xf32> to vector<16x16x4xf32>
    %81 = vector.shape_cast %80 : vector<16x16x4xf32> to vector<256x4xf32>
    %c1_59 = arith.constant 1 : index
    %c0_60 = arith.constant 0 : index
    %c0_61 = arith.constant 0 : index
    %82 = vector.load %arg5[%c1_59, %c0_60, %c0_61] : memref<9x8x4xf32, #tpu.memory_space<vmem>>, vector<1x8x4xf32>
    %83 = vector.shape_cast %82 : vector<1x8x4xf32> to vector<8x4xf32>
    %cst_62 = arith.constant dense<0.000000e+00> : vector<8x256xf32>
    %84 = tpu.matmul %83, %81, %cst_62 {dimension_numbers = #tpu.dot_dimension_numbers<[1], [1], [0], [0], [0, 0, 1, 0], [], []>} : vector<8x4xf32>, vector<256x4xf32>, vector<8x256xf32> -> vector<8x256xf32>
    %85 = arith.addf %79, %84 : vector<8x256xf32>
    %86 = vector.extract_strided_slice %73 {offsets = [0, 2, 0], sizes = [16, 16, 4], strides = [1, 1, 1]} : vector<18x18x4xf32> to vector<16x16x4xf32>
    %87 = vector.shape_cast %86 : vector<16x16x4xf32> to vector<256x4xf32>
    %c2_63 = arith.constant 2 : index
    %c0_64 = arith.constant 0 : index
    %c0_65 = arith.constant 0 : index
    %88 = vector.load %arg5[%c2_63, %c0_64, %c0_65] : memref<9x8x4xf32, #tpu.memory_space<vmem>>, vector<1x8x4xf32>
    %89 = vector.shape_cast %88 : vector<1x8x4xf32> to vector<8x4xf32>
    %cst_66 = arith.constant dense<0.000000e+00> : vector<8x256xf32>
    %90 = tpu.matmul %89, %87, %cst_66 {dimension_numbers = #tpu.dot_dimension_numbers<[1], [1], [0], [0], [0, 0, 1, 0], [], []>} : vector<8x4xf32>, vector<256x4xf32>, vector<8x256xf32> -> vector<8x256xf32>
    %91 = arith.addf %85, %90 : vector<8x256xf32>
    %92 = vector.extract_strided_slice %73 {offsets = [1, 0, 0], sizes = [16, 16, 4], strides = [1, 1, 1]} : vector<18x18x4xf32> to vector<16x16x4xf32>
    %93 = vector.shape_cast %92 : vector<16x16x4xf32> to vector<256x4xf32>
    %c3_67 = arith.constant 3 : index
    %c0_68 = arith.constant 0 : index
    %c0_69 = arith.constant 0 : index
    %94 = vector.load %arg5[%c3_67, %c0_68, %c0_69] : memref<9x8x4xf32, #tpu.memory_space<vmem>>, vector<1x8x4xf32>
    %95 = vector.shape_cast %94 : vector<1x8x4xf32> to vector<8x4xf32>
    %cst_70 = arith.constant dense<0.000000e+00> : vector<8x256xf32>
    %96 = tpu.matmul %95, %93, %cst_70 {dimension_numbers = #tpu.dot_dimension_numbers<[1], [1], [0], [0], [0, 0, 1, 0], [], []>} : vector<8x4xf32>, vector<256x4xf32>, vector<8x256xf32> -> vector<8x256xf32>
    %97 = arith.addf %91, %96 : vector<8x256xf32>
    %98 = vector.extract_strided_slice %73 {offsets = [1, 1, 0], sizes = [16, 16, 4], strides = [1, 1, 1]} : vector<18x18x4xf32> to vector<16x16x4xf32>
    %99 = vector.shape_cast %98 : vector<16x16x4xf32> to vector<256x4xf32>
    %c4_71 = arith.constant 4 : index
    %c0_72 = arith.constant 0 : index
    %c0_73 = arith.constant 0 : index
    %100 = vector.load %arg5[%c4_71, %c0_72, %c0_73] : memref<9x8x4xf32, #tpu.memory_space<vmem>>, vector<1x8x4xf32>
    %101 = vector.shape_cast %100 : vector<1x8x4xf32> to vector<8x4xf32>
    %cst_74 = arith.constant dense<0.000000e+00> : vector<8x256xf32>
    %102 = tpu.matmul %101, %99, %cst_74 {dimension_numbers = #tpu.dot_dimension_numbers<[1], [1], [0], [0], [0, 0, 1, 0], [], []>} : vector<8x4xf32>, vector<256x4xf32>, vector<8x256xf32> -> vector<8x256xf32>
    %103 = arith.addf %97, %102 : vector<8x256xf32>
    %104 = vector.extract_strided_slice %73 {offsets = [1, 2, 0], sizes = [16, 16, 4], strides = [1, 1, 1]} : vector<18x18x4xf32> to vector<16x16x4xf32>
    %105 = vector.shape_cast %104 : vector<16x16x4xf32> to vector<256x4xf32>
    %c5_75 = arith.constant 5 : index
    %c0_76 = arith.constant 0 : index
    %c0_77 = arith.constant 0 : index
    %106 = vector.load %arg5[%c5_75, %c0_76, %c0_77] : memref<9x8x4xf32, #tpu.memory_space<vmem>>, vector<1x8x4xf32>
    %107 = vector.shape_cast %106 : vector<1x8x4xf32> to vector<8x4xf32>
    %cst_78 = arith.constant dense<0.000000e+00> : vector<8x256xf32>
    %108 = tpu.matmul %107, %105, %cst_78 {dimension_numbers = #tpu.dot_dimension_numbers<[1], [1], [0], [0], [0, 0, 1, 0], [], []>} : vector<8x4xf32>, vector<256x4xf32>, vector<8x256xf32> -> vector<8x256xf32>
    %109 = arith.addf %103, %108 : vector<8x256xf32>
    %110 = vector.extract_strided_slice %73 {offsets = [2, 0, 0], sizes = [16, 16, 4], strides = [1, 1, 1]} : vector<18x18x4xf32> to vector<16x16x4xf32>
    %111 = vector.shape_cast %110 : vector<16x16x4xf32> to vector<256x4xf32>
    %c6_79 = arith.constant 6 : index
    %c0_80 = arith.constant 0 : index
    %c0_81 = arith.constant 0 : index
    %112 = vector.load %arg5[%c6_79, %c0_80, %c0_81] : memref<9x8x4xf32, #tpu.memory_space<vmem>>, vector<1x8x4xf32>
    %113 = vector.shape_cast %112 : vector<1x8x4xf32> to vector<8x4xf32>
    %cst_82 = arith.constant dense<0.000000e+00> : vector<8x256xf32>
    %114 = tpu.matmul %113, %111, %cst_82 {dimension_numbers = #tpu.dot_dimension_numbers<[1], [1], [0], [0], [0, 0, 1, 0], [], []>} : vector<8x4xf32>, vector<256x4xf32>, vector<8x256xf32> -> vector<8x256xf32>
    %115 = arith.addf %109, %114 : vector<8x256xf32>
    %116 = vector.extract_strided_slice %73 {offsets = [2, 1, 0], sizes = [16, 16, 4], strides = [1, 1, 1]} : vector<18x18x4xf32> to vector<16x16x4xf32>
    %117 = vector.shape_cast %116 : vector<16x16x4xf32> to vector<256x4xf32>
    %c7_83 = arith.constant 7 : index
    %c0_84 = arith.constant 0 : index
    %c0_85 = arith.constant 0 : index
    %118 = vector.load %arg5[%c7_83, %c0_84, %c0_85] : memref<9x8x4xf32, #tpu.memory_space<vmem>>, vector<1x8x4xf32>
    %119 = vector.shape_cast %118 : vector<1x8x4xf32> to vector<8x4xf32>
    %cst_86 = arith.constant dense<0.000000e+00> : vector<8x256xf32>
    %120 = tpu.matmul %119, %117, %cst_86 {dimension_numbers = #tpu.dot_dimension_numbers<[1], [1], [0], [0], [0, 0, 1, 0], [], []>} : vector<8x4xf32>, vector<256x4xf32>, vector<8x256xf32> -> vector<8x256xf32>
    %121 = arith.addf %115, %120 : vector<8x256xf32>
    %122 = vector.extract_strided_slice %73 {offsets = [2, 2, 0], sizes = [16, 16, 4], strides = [1, 1, 1]} : vector<18x18x4xf32> to vector<16x16x4xf32>
    %123 = vector.shape_cast %122 : vector<16x16x4xf32> to vector<256x4xf32>
    %c8_87 = arith.constant 8 : index
    %c0_88 = arith.constant 0 : index
    %c0_89 = arith.constant 0 : index
    %124 = vector.load %arg5[%c8_87, %c0_88, %c0_89] : memref<9x8x4xf32, #tpu.memory_space<vmem>>, vector<1x8x4xf32>
    %125 = vector.shape_cast %124 : vector<1x8x4xf32> to vector<8x4xf32>
    %cst_90 = arith.constant dense<0.000000e+00> : vector<8x256xf32>
    %126 = tpu.matmul %125, %123, %cst_90 {dimension_numbers = #tpu.dot_dimension_numbers<[1], [1], [0], [0], [0, 0, 1, 0], [], []>} : vector<8x4xf32>, vector<256x4xf32>, vector<8x256xf32> -> vector<8x256xf32>
    %127 = arith.addf %121, %126 : vector<8x256xf32>
    %c0_91 = arith.constant 0 : index
    %c0_92 = arith.constant 0 : index
    %128 = vector.load %arg6[%c0_91, %c0_92] : memref<8x1xf32, #tpu.memory_space<vmem>>, vector<8x1xf32>
    %129 = vector.broadcast %128 : vector<8x1xf32> to vector<8x256xf32>
    %130 = arith.addf %127, %129 : vector<8x256xf32>
    %c0_93 = arith.constant 0 : index
    %c0_94 = arith.constant 0 : index
    %c0_95 = arith.constant 0 : index
    %131 = vector.load %arg7[%c0_93, %c0_94, %c0_95] : memref<1x8x256xf32, #tpu.memory_space<vmem>>, vector<1x8x256xf32>
    %132 = vector.shape_cast %131 : vector<1x8x256xf32> to vector<8x256xf32>
    %133 = vector.shape_cast %130 : vector<8x256xf32> to vector<1x8x256xf32>
    tpu.vector_store %arg7[%c0_93, %c0_94, %c0_95], %133 {strides = array<i32>} : memref<1x8x256xf32, #tpu.memory_space<vmem>>, vector<1x8x256xf32>,
    return
  }
  func.func @transform_0(%arg0: i32) -> (i32, i32, i32, i32) {
    %c0_i32 = arith.constant 0 : i32
    %c0_i32_0 = arith.constant 0 : i32
    %c0_i32_1 = arith.constant 0 : i32
    %c0_i32_2 = arith.constant 0 : i32
    return %arg0, %c0_i32, %c0_i32_0, %c0_i32_1 : i32, i32, i32, i32
  }
  func.func @transform_1(%arg0: i32) -> (i32, i32, i32) {
    %c0_i32 = arith.constant 0 : i32
    %c0_i32_0 = arith.constant 0 : i32
    %c0_i32_1 = arith.constant 0 : i32
    %c0_i32_2 = arith.constant 0 : i32
    return %c0_i32, %c0_i32_0, %c0_i32_1 : i32, i32, i32
  }
  func.func @transform_2(%arg0: i32) -> (i32, i32) {
    %c0_i32 = arith.constant 0 : i32
    %c0_i32_0 = arith.constant 0 : i32
    %c0_i32_1 = arith.constant 0 : i32
    return %c0_i32, %c0_i32_0 : i32, i32
  }
  func.func @transform_3(%arg0: i32) -> (i32, i32) {
    %c0_i32 = arith.constant 0 : i32
    %c0_i32_0 = arith.constant 0 : i32
    %c0_i32_1 = arith.constant 0 : i32
    return %c0_i32, %c0_i32_0 : i32, i32
  }
  func.func @transform_4(%arg0: i32) -> (i32, i32, i32) {
    %c0_i32 = arith.constant 0 : i32
    %c0_i32_0 = arith.constant 0 : i32
    %c0_i32_1 = arith.constant 0 : i32
    %c0_i32_2 = arith.constant 0 : i32
    return %c0_i32, %c0_i32_0, %c0_i32_1 : i32, i32, i32
  }
  func.func @transform_5(%arg0: i32) -> (i32, i32) {
    %c0_i32 = arith.constant 0 : i32
    %c0_i32_0 = arith.constant 0 : i32
    %c0_i32_1 = arith.constant 0 : i32
    return %c0_i32, %c0_i32_0 : i32, i32
  }
  func.func @transform_6(%arg0: i32) -> (i32, i32, i32) {
    %c0_i32 = arith.constant 0 : i32
    %c0_i32_0 = arith.constant 0 : i32
    %c0_i32_1 = arith.constant 0 : i32
    return %arg0, %c0_i32, %c0_i32_0 : i32, i32, i32
  }
}

</mosaic_0001>

<bundles_post_ra>
// kernel: _dbb_forward.1
= control target key start
LH: loop header
LB: loop body
LE: loop exit
PB: predicated region body
PF: predicated region fallthrough
CT: control target
= control target key end

     0   :  { %s5572_s21 = smov 0   ;;  %s7775_s0 = inlined_call_operand.vmem [shape: f32[2,16,16,4], index: 0, kind: input, shape index: {}]   ;;  %s7776_s1 = inlined_call_operand.vmem [shape: f32[9,8,4], index: 1, kind: input, shape index: {}]   ;;  %s7777_s2 = inlined_call_operand.vmem [shape: f32[4,4], index: 2, kind: input, shape index: {}]   ;;  %s7778_s3 = inlined_call_operand.vmem [shape: f32[1,4], index: 3, kind: input, shape index: {}]   ;;  %s7779_s4 = inlined_call_operand.vmem [shape: f32[9,8,4], index: 4, kind: input, shape index: {}]   ;;  %s7780_s5 = inlined_call_operand.vmem [shape: f32[8,1], index: 5, kind: input, shape index: {}]   ;;  %s7781_s6 = inlined_call_operand.vmem [shape: f32[2,8,256], index: 6, kind: output, shape index: {}]  }
   0x1 LB: > { %s3266_s22 = sadd.s32 4294967295, %s5533_s21   ;;  %p3270_p0 = scmp.ge.s32.totalorder %s5533_s21, 1  ;;  %s5533_s21 = sphi %s5572_s21, %s16_s21  }
   0x2   : > { %p212_p1 = scmp.lt.s32.totalorder %s5533_s21, 3 }
   0x4   : > { %p213_p2 = pnand %p3270_p0, %p212_p1 }
   0x6   : > { %216 = sbr.rel (%p213_p2) target bundleno = 1564 (0x61c), region = 44 }
   0xd   : > { %p5582_p3 = scmp.lt.s32.totalorder %s3266_s22, 1  ;;  %vm284_vm0 = vcmask 31744   ;;  %vm287_vm1 = vcmask 25600   ;;  %v5589_v0 = vld [vmem:[%s7776_s1 + $0x8] sm:$0xff]  ;;  %v5535_v1 = vmov 0.0   ;;  %vm476_vm2 = vcmask 1046528  }
   0xe   : > { %310 = vst.msk [vmem:[#allocation2 + $0xc0] sm:$0xff] %vm284_vm0, %v5535_v1  ;;  %311 = vst.msk [vmem:[#allocation2 + $0xc8] sm:$0xff] %vm284_vm0, %v5535_v1  ;;  %3955 = vmatprep.mubr.msk.f32.mxu1 %vm284_vm0, %v5589_v0  ;;  %vm835_vm4 = vcmask 1045504   ;;  %vm1680_vm5 = vcmask 1043456  }
   0xf   : > { %312 = vst.msk [vmem:[#allocation2 + $0xd0] sm:$0x3] %vm287_vm1, %v5535_v1  ;;  %288 = vst.msk [vmem:[#allocation2 + $0x10] sm:$0x3] %vm287_vm1, %v5535_v1  ;;  %s8005_s22 = smov (!%p5582_p3, %s3266_s22), 1 }
  0x10   : > { %285 = vst.msk [vmem:[#allocation2] sm:$0xff] %vm284_vm0, %v5535_v1  ;;  %286 = vst.msk [vmem:[#allocation2 + $0x8] sm:$0xff] %vm284_vm0, %v5535_v1  ;;  %s3921_s26 = sshll.u32 %s8005_s22, 8 }
  0x11   : > { %289 = vst.msk [vmem:[#allocation2 + $0x18] sm:$0xff] %vm284_vm0, %v5535_v1  ;;  %290 = vst.msk [vmem:[#allocation2 + $0x20] sm:$0xff] %vm284_vm0, %v5535_v1  ;;  %s5657_s29 = scalar_lea.vmem %s7775_s0, %s3921_s26  ;;  %s3922_s26 = sshll.u32 %s8005_s22, 4 }
  0x12   : > { %291 = vst.msk [vmem:[#allocation2 + $0x28] sm:$0x3] %vm287_vm1, %v5535_v1  ;;  %294 = vst.msk [vmem:[#allocation2 + $0x40] sm:$0x3] %vm287_vm1, %v5535_v1  ;;  %v5660_v2 = vld [vmem:[%s5657_s29 + $0x70] sm:$0xff]  ;;  %v5663_v3 = vld [vmem:[%s5657_s29 + $0x78] sm:$0xff] }
  0x13   : > { %292 = vst.msk [vmem:[#allocation2 + $0x30] sm:$0xff] %vm284_vm0, %v5535_v1  ;;  %293 = vst.msk [vmem:[#allocation2 + $0x38] sm:$0xff] %vm284_vm0, %v5535_v1  ;;  %v5666_v4 = vld [vmem:[%s5657_s29 + $0x80] sm:$0xff]  ;;  %v5673_v5 = vld [vmem:[%s5657_s29 + $0x88] sm:$0xff] }
  0x14   : > { %295 = vst.msk [vmem:[#allocation2 + $0x48] sm:$0xff] %vm284_vm0, %v5535_v1  ;;  %296 = vst.msk [vmem:[#allocation2 + $0x50] sm:$0xff] %vm284_vm0, %v5535_v1  ;;  %v5678_v6 = vld [vmem:[%s5657_s29] sm:$0xff]  ;;  %v5681_v7 = vld [vmem:[%s5657_s29 + $0x8] sm:$0xff] }
  0x15   : > { %297 = vst.msk [vmem:[#allocation2 + $0x58] sm:$0x3] %vm287_vm1, %v5535_v1  ;;  %300 = vst.msk [vmem:[#allocation2 + $0x70] sm:$0x3] %vm287_vm1, %v5535_v1  ;;  %v5699_v14 = vld [vmem:[%s5657_s29 + $0x90] sm:$0xff]  ;;  %v5702_v15 = vld [vmem:[%s5657_s29 + $0x98] sm:$0xff] }
  0x16   : > { %298 = vst.msk [vmem:[#allocation2 + $0x60] sm:$0xff] %vm284_vm0, %v5535_v1  ;;  %299 = vst.msk [vmem:[#allocation2 + $0x68] sm:$0xff] %vm284_vm0, %v5535_v1  ;;  %v5687_v10 = vld [vmem:[#allocation2 + $0x10] sm:$0x3]  ;;  %v5712_v17 = vld [vmem:[%s5657_s29 + $0x18] sm:$0xff] }
  0x17   : > { %301 = vst.msk [vmem:[#allocation2 + $0x78] sm:$0xff] %vm284_vm0, %v5535_v1  ;;  %302 = vst.msk [vmem:[#allocation2 + $0x80] sm:$0xff] %vm284_vm0, %v5535_v1  ;;  %v5683_v8 = vld [vmem:[#allocation2] sm:$0xff]  ;;  %v5685_v9 = vld [vmem:[#allocation2 + $0x8] sm:$0xff]  ;;  %v480_v13 = vrot.slane %v5687_v10, 1 }
  0x18   : > { %303 = vst.msk [vmem:[#allocation2 + $0x88] sm:$0x3] %vm287_vm1, %v5535_v1  ;;  %306 = vst.msk [vmem:[#allocation2 + $0xa0] sm:$0x3] %vm287_vm1, %v5535_v1  ;;  %v477_v11 = vrot.slane %v5683_v8, 1  ;;  %v478_v12 = vrot.slane %v5685_v9, 1 }
  0x19   : > { %304 = vst.msk [vmem:[#allocation2 + $0x90] sm:$0xff] %vm284_vm0, %v5535_v1  ;;  %305 = vst.msk [vmem:[#allocation2 + $0x98] sm:$0xff] %vm284_vm0, %v5535_v1  ;;  %v5709_v16 = vld [vmem:[%s5657_s29 + $0x10] sm:$0xff]  ;;  %v5715_v18 = vld [vmem:[%s5657_s29 + $0xa0] sm:$0xff] }
  0x1a   : > { %307 = vst.msk [vmem:[#allocation2 + $0xa8] sm:$0xff] %vm284_vm0, %v5535_v1  ;;  %308 = vst.msk [vmem:[#allocation2 + $0xb0] sm:$0xff] %vm284_vm0, %v5535_v1  ;;  %v5724_v20 = vld [vmem:[%s5657_s29 + $0xa8] sm:$0xff]  ;;  %v5729_v21 = vld [vmem:[%s5657_s29 + $0x20] sm:$0xff]  ;;  %v479_v26 = vsel %vm476_vm2, %v477_v11, %v478_v12  ;;  %v481_v27 = vsel %vm476_vm2, %v478_v12, %v480_v13 }
  0x1b   : > { %309 = vst.msk [vmem:[#allocation2 + $0xb8] sm:$0x3] %vm287_vm1, %v5535_v1  ;;  %315 = vst.msk [vmem:[#allocation2 + $0xe8] sm:$0x3] %vm287_vm1, %v5535_v1  ;;  %v5732_v22 = vld [vmem:[%s5657_s29 + $0x28] sm:$0xff]  ;;  %v5741_v23 = vld [vmem:[%s5657_s29 + $0xb0] sm:$0xff]  ;;  %v4621_v40 = vpack.c.bf16 %v481_v27, %v479_v26 }
  0x1c   : > { %313 = vst.msk [vmem:[#allocation2 + $0xd8] sm:$0xff] %vm284_vm0, %v5535_v1  ;;  %314 = vst.msk [vmem:[#allocation2 + $0xe0] sm:$0xff] %vm284_vm0, %v5535_v1  ;;  %v5744_v24 = vld [vmem:[%s5657_s29 + $0xb8] sm:$0xff]  ;;  %v5747_v25 = vld [vmem:[%s5657_s29 + $0x30] sm:$0xff] }
  0x1d   : > { %316 = vst.msk [vmem:[#allocation2 + $0xf0] sm:$0xff] %vm284_vm0, %v5535_v1  ;;  %317 = vst.msk [vmem:[#allocation2 + $0xf8] sm:$0xff] %vm284_vm0, %v5535_v1  ;;  %v5756_v28 = vld [vmem:[%s5657_s29 + $0x38] sm:$0xff]  ;;  %v5761_v29 = vld [vmem:[%s5657_s29 + $0xc0] sm:$0xff] }
  0x1e   : > { %318 = vst.msk [vmem:[#allocation2 + $0x100] sm:$0x3] %vm287_vm1, %v5535_v1  ;;  %321 = vst.msk [vmem:[#allocation2 + $0x118] sm:$0x3] %vm287_vm1, %v5535_v1  ;;  %v5764_v30 = vld [vmem:[%s5657_s29 + $0xc8] sm:$0xff]  ;;  %v5875_v19 = vld [vmem:[%s5657_s29 + $0xd0] sm:$0xff] }
  0x1f   : > { %319 = vst.msk [vmem:[#allocation2 + $0x108] sm:$0xff] %vm284_vm0, %v5535_v1  ;;  %320 = vst.msk [vmem:[#allocation2 + $0x110] sm:$0xff] %vm284_vm0, %v5535_v1 }
  0x20   : > { %322 = vst.msk [vmem:[#allocation2 + $0x120] sm:$0xff] %vm284_vm0, %v5535_v1  ;;  %323 = vst.msk [vmem:[#allocation2 + $0x128] sm:$0xff] %vm284_vm0, %v5535_v1 }
  0x21   : > { %324 = vst.msk [vmem:[#allocation2 + $0x130] sm:$0x3] %vm287_vm1, %v5535_v1  ;;  %327 = vst.msk [vmem:[#allocation2 + $0x148] sm:$0x3] %vm287_vm1, %v5535_v1 }
  0x22   : > { %325 = vst.msk [vmem:[#allocation2 + $0x138] sm:$0xff] %vm284_vm0, %v5535_v1  ;;  %326 = vst.msk [vmem:[#allocation2 + $0x140] sm:$0xff] %vm284_vm0, %v5535_v1 }
  0x23   : > { %328 = vst.msk [vmem:[#allocation2 + $0x150] sm:$0xff] %vm284_vm0, %v5535_v1  ;;  %329 = vst.msk [vmem:[#allocation2 + $0x158] sm:$0xff] %vm284_vm0, %v5535_v1 }
  0x24   : > { %330 = vst.msk [vmem:[#allocation2 + $0x160] sm:$0x3] %vm287_vm1, %v5535_v1  ;;  %333 = vst.msk [vmem:[#allocation2 + $0x178] sm:$0x3] %vm287_vm1, %v5535_v1 }
  0x25   : > { %331 = vst.msk [vmem:[#allocation2 + $0x168] sm:$0xff] %vm284_vm0, %v5535_v1  ;;  %332 = vst.msk [vmem:[#allocation2 + $0x170] sm:$0xff] %vm284_vm0, %v5535_v1 }
  0x26   : > { %334 = vst.msk [vmem:[#allocation2 + $0x180] sm:$0xff] %vm284_vm0, %v5535_v1  ;;  %335 = vst.msk [vmem:[#allocation2 + $0x188] sm:$0xff] %vm284_vm0, %v5535_v1 }
  0x27   : > { %336 = vst.msk [vmem:[#allocation2 + $0x190] sm:$0x3] %vm287_vm1, %v5535_v1  ;;  %339 = vst.msk [vmem:[#allocation2 + $0x1a8] sm:$0x3] %vm287_vm1, %v5535_v1 }
  0x28   : > { %337 = vst.msk [vmem:[#allocation2 + $0x198] sm:$0xff] %vm284_vm0, %v5535_v1  ;;  %338 = vst.msk [vmem:[#allocation2 + $0x1a0] sm:$0xff] %vm284_vm0, %v5535_v1 }
  0x29   : > { %7865 = vst [vmem:[#allocation4_spill] sm:$0xff] %v5660_v2  ;;  %7866 = vst [vmem:[#allocation5_spill] sm:$0xff] %v5663_v3 }
  0x2a   : > { %7867 = vst [vmem:[#allocation6_spill] sm:$0xff] %v5666_v4  ;;  %355 = vst.msk [vmem:[#allocation2 + $0xc1] sm:$0xff] %vm284_vm0, %v5660_v2 }
  0x2b   : > { %356 = vst.msk [vmem:[#allocation2 + $0xc9] sm:$0xff] %vm284_vm0, %v5663_v3  ;;  %7868 = vst [vmem:[#allocation7_spill] sm:$0xff] %v5673_v5 }
  0x2c   : > { %357 = vst.msk [vmem:[#allocation2 + $0xd9] sm:$0xff] %vm284_vm0, %v5666_v4  ;;  %7869 = vst [vmem:[#allocation8_spill] sm:$0xff] %v5678_v6 }
  0x2d   : > { %7870 = vst [vmem:[#allocation9_spill] sm:$0xff] %v5681_v7  ;;  %7871 = vst [vmem:[#allocation10_spill] sm:$0xff] %v5683_v8 }
  0x2e   : > { %358 = vst.msk [vmem:[#allocation2 + $0xe1] sm:$0xff] %vm284_vm0, %v5673_v5  ;;  %341 = vst.msk [vmem:[#allocation2 + $0x19] sm:$0xff] %vm284_vm0, %v5678_v6 }
  0x2f   : > { %342 = vst.msk [vmem:[#allocation2 + $0x21] sm:$0xff] %vm284_vm0, %v5681_v7  ;;  %7872 = vst [vmem:[#allocation11_spill] sm:$0xff] %v5699_v14 }
  0x30   : > { %7873 = vst [vmem:[#allocation12_spill] sm:$0xff] %v5702_v15  ;;  %359 = vst.msk [vmem:[#allocation2 + $0xf1] sm:$0xff] %vm284_vm0, %v5699_v14 }
  0x31   : > { %360 = vst.msk [vmem:[#allocation2 + $0xf9] sm:$0xff] %vm284_vm0, %v5702_v15  ;;  %7874 = vst [vmem:[#allocation13_spill] sm:$0xff] %v5709_v16  ;;  %v5766_v31 = vld [vmem:[#allocation2 + $0xc0] sm:$0xff] }
  0x32   : > { %7875 = vst [vmem:[#allocation14_spill] sm:$0xff] %v5712_v17  ;;  %7876 = vst [vmem:[#allocation15_spill] sm:$0xff] %v5715_v18  ;;  %v5768_v32 = vld [vmem:[#allocation2 + $0xc8] sm:$0xff]  ;;  %v5770_v33 = vld [vmem:[#allocation2 + $0xd0] sm:$0x3]  ;;  %v517_v34 = vrot.slane %v5766_v31, 1 }
  0x33   : > { %343 = vst.msk [vmem:[#allocation2 + $0x31] sm:$0xff] %vm284_vm0, %v5709_v16  ;;  %344 = vst.msk [vmem:[#allocation2 + $0x39] sm:$0xff] %vm284_vm0, %v5712_v17  ;;  %v518_v35 = vrot.slane %v5768_v32, 1  ;;  %v520_v36 = vrot.slane %v5770_v33, 1  ;;  %v5787_v38 = vld [vmem:[#allocation2 + $0xd8] sm:$0xff] }
  0x34   : > { %7877 = vst [vmem:[#allocation16_spill] sm:$0xff] %v5724_v20  ;;  %361 = vst.msk [vmem:[#allocation2 + $0x109] sm:$0xff] %vm284_vm0, %v5715_v18  ;;  %v522_v42 = vrot.slane %v5787_v38, 1  ;;  %v5908_v18 = vld [vmem:[%s5657_s29 + $0xe8] sm:$0xff] }
  0x35   : > { %7878 = vst [vmem:[#allocation17_spill] sm:$0xff] %v5729_v21  ;;  %7879 = vst [vmem:[#allocation18_spill] sm:$0xff] %v5732_v22  ;;  %v5789_v39 = vld [vmem:[#allocation2 + $0xe0] sm:$0xff]  ;;  %v5791_v41 = vld [vmem:[#allocation2 + $0xe8] sm:$0x3]  ;;  %v519_v47 = vsel %vm476_vm2, %v517_v34, %v518_v35  ;;  %v521_v48 = vsel %vm476_vm2, %v518_v35, %v520_v36 }
  0x36   : > { %362 = vst.msk [vmem:[#allocation2 + $0x111] sm:$0xff] %vm284_vm0, %v5724_v20  ;;  %345 = vst.msk [vmem:[#allocation2 + $0x49] sm:$0xff] %vm284_vm0, %v5729_v21  ;;  %v523_v43 = vrot.slane %v5789_v39, 1  ;;  %v5795_v44 = vld [vmem:[#allocation2 + $0x18] sm:$0xff]  ;;  %v5797_v45 = vld [vmem:[#allocation2 + $0x20] sm:$0xff]  ;;  %v5801_v46 = vpack.c.bf16 %v5789_v39, %v5787_v38  ;;  %v525_v49 = vrot.slane %v5791_v41, 1  ;;  %v5813_v54 = vpack.c.bf16 %v521_v48, %v519_v47 }
  0x37   : > { %346 = vst.msk [vmem:[#allocation2 + $0x51] sm:$0xff] %vm284_vm0, %v5732_v22  ;;  %7880 = vst [vmem:[#allocation19_spill] sm:$0xff] %v5741_v23  ;;  %v5806_v50 = vld [vmem:[#allocation2 + $0x28] sm:$0x3]  ;;  %v482_v51 = vrot.slane %v5795_v44, 1  ;;  %v5809_v52 = vld [vmem:[#allocation2 + $0xf0] sm:$0xff]  ;;  %v5950_v3 = vpack.c.bf16 %v5797_v45, %v5795_v44 }
  0x38   : > { %7881 = vst [vmem:[#allocation20_spill] sm:$0xff] %v5744_v24  ;;  %7882 = vst [vmem:[#allocation21_spill] sm:$0xff] %v5747_v25  ;;  %v5811_v53 = vld [vmem:[#allocation2 + $0xf8] sm:$0xff]  ;;  %v524_v55 = vsel %vm476_vm2, %v522_v42, %v523_v43  ;;  %v483_v56 = vrot.slane %v5797_v45, 1  ;;  %v485_v57 = vrot.slane %v5806_v50, 1  ;;  %v526_v59 = vsel %vm476_vm2, %v523_v43, %v525_v49 }
  0x39   : > { %363 = vst.msk [vmem:[#allocation2 + $0x121] sm:$0xff] %vm284_vm0, %v5741_v23  ;;  %364 = vst.msk [vmem:[#allocation2 + $0x129] sm:$0xff] %vm284_vm0, %v5744_v24  ;;  %v5818_v58 = vld [vmem:[#allocation2 + $0x100] sm:$0x3]  ;;  %v527_v60 = vrot.slane %v5809_v52, 1  ;;  %v528_v61 = vrot.slane %v5811_v53, 1  ;;  %v5832_v11 = vpack.c.bf16 %v526_v59, %v524_v55 }
  0x3a   : > { %7883 = vst [vmem:[#allocation22_spill] sm:$0xff] %v5756_v28  ;;  %347 = vst.msk [vmem:[#allocation2 + $0x61] sm:$0xff] %vm284_vm0, %v5747_v25  ;;  %v5823_v62 = vld [vmem:[#allocation2 + $0x30] sm:$0xff]  ;;  %v5825_v63 = vld [vmem:[#allocation2 + $0x38] sm:$0xff]  ;;  %v530_v12 = vrot.slane %v5818_v58, 1  ;;  %v484_v34 = vsel %vm476_vm2, %v482_v51, %v483_v56  ;;  %v486_v35 = vsel %vm476_vm2, %v483_v56, %v485_v57 }
  0x3b   : > { %7884 = vst [vmem:[#allocation23_spill] sm:$0xff] %v5761_v29  ;;  %7885 = vst [vmem:[#allocation24_spill] sm:$0xff] %v5764_v30  ;;  %v5827_v1 = vld [vmem:[#allocation2 + $0x40] sm:$0x3]  ;;  %v5835_v13 = vld [vmem:[#allocation2 + $0x108] sm:$0xff]  ;;  %v529_v36 = vsel %vm476_vm2, %v527_v60, %v528_v61  ;;  %v487_v43 = vrot.slane %v5823_v62, 1  ;;  %v5865_v60 = vpack.c.bf16 %v486_v35, %v484_v34 }
  0x3c   : > { %348 = vst.msk [vmem:[#allocation2 + $0x69] sm:$0xff] %vm284_vm0, %v5756_v28  ;;  %365 = vst.msk [vmem:[#allocation2 + $0x139] sm:$0xff] %vm284_vm0, %v5761_v29  ;;  %v531_v42 = vsel %vm476_vm2, %v528_v61, %v530_v12  ;;  %v488_v47 = vrot.slane %v5825_v63, 1  ;;  %v532_v48 = vrot.slane %v5835_v13, 1  ;;  %v5863_v59 = vld [vmem:[%s5657_s29 + $0x40] sm:$0xff]  ;;  %v5870_v12 = vld [vmem:[%s5657_s29 + $0x48] sm:$0xff] }
  0x3d   : > { %366 = vst.msk [vmem:[#allocation2 + $0x141] sm:$0xff] %vm284_vm0, %v5764_v30  ;;  %vm5783_vm3 = vmpackc.low %vm284_vm0, %vm284_vm0  ;;  %v5837_v26 = vld [vmem:[#allocation2 + $0x110] sm:$0xff]  ;;  %v5839_v27 = vld [vmem:[#allocation2 + $0x118] sm:$0x3]  ;;  %v5877_v30 = vpack.c.bf16 %v531_v42, %v529_v36 }
  0x3e   : > { %7888 = vst [vmem:[#allocation25_spill] sm:$0xff] %v5801_v46  ;;  %7889 = vst [vmem:[#allocation26_spill] sm:$0xff] %v5813_v54  ;;  %4620 = vmatprep.subr.msk.bf16.mxu1 %vm5783_vm3, %v5813_v54  ;;  %v533_v49 = vrot.slane %v5837_v26, 1  ;;  %v535_v51 = vrot.slane %v5839_v27, 1  ;;  %v5856_v55 = vld [vmem:[#allocation2 + $0x48] sm:$0xff]  ;;  %v5858_v56 = vld [vmem:[#allocation2 + $0x50] sm:$0xff]  ;;  %v489_v23 = vsel %vm476_vm2, %v487_v43, %v488_v47 }
  0x3f   : > { %7890 = vst [vmem:[#allocation27_spill] sm:$0xff] %v5832_v11  ;;  %4623 = vmatpush3.bf16.xpose.msk.msra.mxu1 %vm5783_vm3, %v4621_v40  ;;  %v490_v40 = vrot.slane %v5827_v1, 1  ;;  %v5860_v57 = vld [vmem:[#allocation2 + $0x58] sm:$0x3]  ;;  %7891 = vst [vmem:[#allocation28_spill] sm:$0xff] %v5863_v59  ;;  %v5889_v35 = vld [vmem:[%s5657_s29 + $0x50] sm:$0xff] }
  0x40   : > { %4626 = vmatprep.subr.msk.bf16.mxu1 %vm5783_vm3, %v5832_v11  ;;  %7892 = vst [vmem:[#allocation29_spill] sm:$0xff] %v5865_v60  ;;  %v5867_v61 = vld [vmem:[#allocation2 + $0x120] sm:$0xff]  ;;  %7893 = vst [vmem:[#allocation30_spill] sm:$0xff] %v5870_v12  ;;  %v5879_v29 = vld [vmem:[#allocation2 + $0x128] sm:$0xff]  ;;  %v534_v42 = vsel %vm476_vm2, %v532_v48, %v533_v49  ;;  %v536_v20 = vsel %vm476_vm2, %v533_v49, %v535_v51  ;;  %v492_v49 = vrot.slane %v5856_v55, 1  ;;  %v493_v51 = vrot.slane %v5858_v56, 1 }
  0x41   : > { %349 = vst.msk [vmem:[#allocation2 + $0x79] sm:$0xff] %vm284_vm0, %v5863_v59  ;;  %7894 = vst [vmem:[#allocation31_spill] sm:$0xff] %v5875_v19  ;;  %v5884_v34 = vld [vmem:[%s5657_s29 + $0xd8] sm:$0xff]  ;;  %v491_v36 = vsel %vm476_vm2, %v488_v47, %v490_v40  ;;  %v5911_v43 = vld [vmem:[%s5657_s29 + $0x60] sm:$0xff]  ;;  %v537_v14 = vrot.slane %v5867_v61, 1  ;;  %v538_v2 = vrot.slane %v5879_v29, 1  ;;  %v5983_v22 = vpack.c.bf16 %v5879_v29, %v5867_v61 }
  0x42   : > { %7895 = vst [vmem:[#allocation32_spill] sm:$0xff] %v5877_v30  ;;  %350 = vst.msk [vmem:[#allocation2 + $0x81] sm:$0xff] %vm284_vm0, %v5870_v12  ;;  %v5892_v24 = vld [vmem:[%s5657_s29 + $0x58] sm:$0xff]  ;;  %v5913_v47 = vld [vmem:[#allocation2 + $0x130] sm:$0x3]  ;;  %v5974_v12 = vpack.c.bf16 %v5858_v56, %v5856_v55  ;;  %v884_v46 = vrot.slane %v5791_v41, 2 }
  0x43   : > { %7896 = vst [vmem:[#allocation33_spill] sm:$0xff] %v5884_v34  ;;  %367 = vst.msk [vmem:[#allocation2 + $0x151] sm:$0xff] %vm284_vm0, %v5875_v19  ;;  %v5905_v19 = vld [vmem:[%s5657_s29 + $0xe0] sm:$0xff]  ;;  %v5922_v48 = vld [vmem:[%s5657_s29 + $0x68] sm:$0xff] }
  0x44   : > { %7897 = vst [vmem:[#allocation34_spill] sm:$0xff] %v5889_v35  ;;  %7898 = vst [vmem:[#allocation35_spill] sm:$0xff] %v5892_v24  ;;  %v5915_v40 = vld [vmem:[#allocation2 + $0x60] sm:$0xff]  ;;  %v5932_v15 = vld [vmem:[#allocation2 + $0x68] sm:$0xff] }
  0x45   : > { %368 = vst.msk [vmem:[#allocation2 + $0x159] sm:$0xff] %vm284_vm0, %v5884_v34  ;;  %351 = vst.msk [vmem:[#allocation2 + $0x91] sm:$0xff] %vm284_vm0, %v5889_v35  ;;  %v495_v34 = vrot.slane %v5860_v57, 1  ;;  %v5944_v5 = vld [vmem:[#allocation2 + $0x70] sm:$0x3]  ;;  %v5946_v4 = vld [vmem:[#allocation2 + $0x138] sm:$0xff]  ;;  %v5970_v35 = vpack.c.bf16 %v5837_v26, %v5835_v13  ;;  %v5987_v21 = vpack.c.bf16 %v5932_v15, %v5915_v40 }
  0x46   : > { %352 = vst.msk [vmem:[#allocation2 + $0x99] sm:$0xff] %vm284_vm0, %v5892_v24  ;;  %7899 = vst [vmem:[#allocation36_spill] sm:$0xff] %v5905_v19  ;;  %v5966_v24 = vpack.c.bf16 %v5825_v63, %v5823_v62  ;;  %v500_v59 = vrot.slane %v5944_v5, 1  ;;  %v542_v16 = vrot.slane %v5946_v4, 1 }
  0x47   : > { %7900 = vst [vmem:[#allocation37_spill] sm:$0xff] %v5908_v18  ;;  %7901 = vst [vmem:[#allocation38_spill] sm:$0xff] %v5911_v43  ;;  %4629 = vmatpush3.bf16.xpose.msk.msra.mxu1 %vm5783_vm3, %v5865_v60 }
  0x48   : > { %369 = vst.msk [vmem:[#allocation2 + $0x169] sm:$0xff] %vm284_vm0, %v5905_v19  ;;  %370 = vst.msk [vmem:[#allocation2 + $0x171] sm:$0xff] %vm284_vm0, %v5908_v18  ;;  %4632 = vmatprep.subr.msk.bf16.mxu1 %vm5783_vm3, %v5877_v30  ;;  %v5939_v18 = vpack.c.bf16 %v491_v36, %v489_v23  ;;  %v5941_v19 = vpack.c.bf16 %v536_v20, %v534_v42  ;;  %v5955_v23 = vld [vmem:[#allocation2 + $0x140] sm:$0xff]  ;;  %v5957_v20 = vld [vmem:[#allocation2 + $0x148] sm:$0x3]  ;;  %v5961_v36 = vpack.c.bf16 %v5811_v53, %v5809_v52 }
  0x49   : > { %7902 = vst [vmem:[#allocation39_spill] sm:$0xff] %v5922_v48  ;;  %353 = vst.msk [vmem:[#allocation2 + $0xa9] sm:$0xff] %vm284_vm0, %v5911_v43  ;;  %v497_v43 = vrot.slane %v5915_v40, 1  ;;  %v498_v42 = vrot.slane %v5932_v15, 1  ;;  %v5977_v28 = vld [vmem:[#allocation2 + $0x78] sm:$0xff]  ;;  %v5979_v25 = vld [vmem:[#allocation2 + $0x80] sm:$0xff]  ;;  %v5991_v17 = vpack.c.bf16 %v5955_v23, %v5946_v4 }
  0x4a   : > { %354 = vst.msk [vmem:[#allocation2 + $0xb1] sm:$0xff] %vm284_vm0, %v5922_v48  ;;  %7903 = vst [vmem:[#allocation40_spill] sm:$0xff] %v5939_v18  ;;  %v540_v48 = vrot.slane %v5913_v47, 1  ;;  %v543_v7 = vrot.slane %v5955_v23, 1  ;;  %v545_v6 = vrot.slane %v5957_v20, 1  ;;  %v5996_v54 = vld [vmem:[#allocation2 + $0x150] sm:$0xff]  ;;  %v6002_v60 = vpack.c.bf16 %v5979_v25, %v5977_v28 }
  0x4b   : > { %7904 = vst [vmem:[#allocation41_spill] sm:$0xff] %v5941_v19  ;;  %7905 = vst [vmem:[#allocation42_spill] sm:$0xff] %v5950_v3  ;;  %v882_v3 = vrot.slane %v5789_v39, 2 }
  0x4c   : > { %7906 = vst [vmem:[#allocation43_spill] sm:$0xff] %v5961_v36  ;;  %7907 = vst [vmem:[#allocation44_spill] sm:$0xff] %v5966_v24  ;;  %v5998_v30 = vld [vmem:[#allocation2 + $0x158] sm:$0xff]  ;;  %v501_v24 = vsel %vm476_vm2, %v498_v42, %v500_v59  ;;  %v544_v36 = vsel %vm476_vm2, %v542_v16, %v543_v7 }
  0x4d   : > { %7908 = vst [vmem:[#allocation45_spill] sm:$0xff] %v5970_v35  ;;  %7909 = vst [vmem:[#allocation46_spill] sm:$0xff] %v5974_v12  ;;  %v6006_v11 = vpack.c.bf16 %v5998_v30, %v5996_v54  ;;  %v496_v12 = vsel %vm476_vm2, %v493_v51, %v495_v34  ;;  %v539_v35 = vsel %vm476_vm2, %v537_v14, %v538_v2  ;;  %v839_v34 = vrot.slane %v5687_v10, 2  ;;  %v6028_v14 = vld [vmem:[#allocation2 + $0x90] sm:$0xff]  ;;  %v6036_v16 = vld [vmem:[#allocation2 + $0x98] sm:$0xff] }
  0x4e   : > { %7910 = vst [vmem:[#allocation47_spill] sm:$0xff] %v5983_v22  ;;  %7911 = vst [vmem:[#allocation48_spill] sm:$0xff] %v5987_v21  ;;  %v837_v21 = vrot.slane %v5685_v9, 2  ;;  %v494_v22 = vsel %vm476_vm2, %v492_v49, %v493_v51  ;;  %v879_v49 = vrot.slane %v5770_v33, 2  ;;  %v6026_v51 = vld [vmem:[#allocation2 + $0x88] sm:$0x3]  ;;  %v885_v41 = vsel %vm835_vm4, %v882_v3, %v884_v46 }
  0x4f   : > { %7912 = vst [vmem:[#allocation49_spill] sm:$0xff] %v5991_v17  ;;  %7913 = vst [vmem:[#allocation50_spill] sm:$0xff] %v6002_v60  ;;  %v836_v17 = vrot.slane %v5683_v8, 2  ;;  %4635 = vmatpush3.bf16.xpose.msk.msra.mxu1 %vm5783_vm3, %v5939_v18  ;;  %v541_v60 = vsel %vm476_vm2, %v538_v2, %v540_v48  ;;  %v546_v18 = vsel %vm476_vm2, %v543_v7, %v545_v6  ;;  %v844_v2 = vrot.slane %v5806_v50, 2  ;;  %v6038_v6 = vld [vmem:[#allocation2 + $0x168] sm:$0xff]  ;;  %v6040_v7 = vld [vmem:[#allocation2 + $0x170] sm:$0xff] }
  0x50   : > { %7914 = vst [vmem:[#allocation51_spill] sm:$0xff] %v6006_v11  ;;  %4638 = vmatprep.subr.msk.bf16.mxu1 %vm5783_vm3, %v5941_v19  ;;  %v499_v11 = vsel %vm476_vm2, %v497_v43, %v498_v42  ;;  %v849_v48 = vrot.slane %v5827_v1, 2  ;;  %v6032_v43 = vpack.c.bf16 %v496_v12, %v494_v22  ;;  %v6034_v59 = vpack.c.bf16 %v541_v60, %v539_v35  ;;  %v6046_v42 = vld [vmem:[#allocation2 + $0xa8] sm:$0xff] }
  0x51   : > { %v6042_v10 = vpack.c.bf16 %v501_v24, %v499_v11  ;;  %v6044_v33 = vpack.c.bf16 %v546_v18, %v544_v36  ;;  %v6048_v19 = vld [vmem:[#allocation2 + $0xb0] sm:$0xff]  ;;  %v6052_v22 = vpack.c.bf16 %v6036_v16, %v6028_v14  ;;  %v6056_v50 = vpack.c.bf16 %v6040_v7, %v6038_v6 }
  0x52   : > { %7915 = vst [vmem:[#allocation52_spill] sm:$0xff] %v6034_v59  ;;  %v502_v1 = vrot.slane %v5977_v28, 1  ;;  %v503_v60 = vrot.slane %v5979_v25, 1  ;;  %v505_v24 = vrot.slane %v6026_v51, 1  ;;  %v6063_v18 = vpack.c.bf16 %v6048_v19, %v6046_v42 }
  0x53   : > { %7916 = vst [vmem:[#allocation53_spill] sm:$0xff] %v6052_v22  ;;  %7917 = vst [vmem:[#allocation54_spill] sm:$0xff] %v6056_v50  ;;  %v547_v11 = vrot.slane %v5996_v54, 1  ;;  %v876_v12 = vrot.slane %v5766_v31, 2  ;;  %v877_v35 = vrot.slane %v5768_v32, 2  ;;  %v6069_v36 = vsel %vm835_vm4, %v836_v17, %v837_v21 }
  0x54   : > { %7918 = vst [vmem:[#allocation55_spill] sm:$0xff] %v6063_v18  ;;  %v6072_v50 = vsel %vm835_vm4, %v837_v21, %v839_v34  ;;  %v881_v22 = vrot.slane %v5787_v38, 2  ;;  %v841_v21 = vrot.slane %v5795_v44, 2  ;;  %v842_v34 = vrot.slane %v5797_v45, 2  ;;  %v6098_v17 = vld [vmem:[#allocation2 + $0x160] sm:$0x3] }
  0x55   : > { %v878_v18 = vsel %vm835_vm4, %v876_v12, %v877_v35  ;;  %v880_v8 = vsel %vm835_vm4, %v877_v35, %v879_v49  ;;  %v886_v49 = vrot.slane %v5809_v52, 2  ;;  %v887_v35 = vrot.slane %v5811_v53, 2 }
  0x56   : > { %v6088_v38 = vpack.c.bf16 %v880_v8, %v878_v18  ;;  %v883_v39 = vsel %vm835_vm4, %v881_v22, %v882_v3  ;;  %v889_v44 = vrot.slane %v5818_v58, 2  ;;  %v845_v8 = vsel %vm835_vm4, %v842_v34, %v844_v2 }
  0x57   : > { %4641 = vmatpush3.bf16.xpose.msk.msra.mxu1 %vm5783_vm3, %v6032_v43  ;;  %v6093_v12 = vpack.c.bf16 %v885_v41, %v883_v39  ;;  %v846_v22 = vrot.slane %v5823_v62, 2  ;;  %v847_v3 = vrot.slane %v5825_v63, 2  ;;  %v888_v45 = vsel %vm835_vm4, %v886_v49, %v887_v35 }
  0x58   : > { %4644 = vmatprep.subr.msk.bf16.mxu1 %vm5783_vm3, %v6034_v59  ;;  %v843_v59 = vsel %vm835_vm4, %v841_v21, %v842_v34  ;;  %v890_v52 = vsel %vm835_vm4, %v887_v35, %v889_v44  ;;  %v891_v53 = vrot.slane %v5835_v13, 2  ;;  %v892_v2 = vrot.slane %v5837_v26, 2  ;;  %v6145_v44 = vld [vmem:[#allocation2 + $0xa0] sm:$0x3] }
  0x59   : > { %v6104_v46 = vpack.c.bf16 %v845_v8, %v843_v59  ;;  %v6109_v18 = vpack.c.bf16 %v890_v52, %v888_v45  ;;  %v848_v58 = vsel %vm835_vm4, %v846_v22, %v847_v3  ;;  %v850_v21 = vsel %vm835_vm4, %v847_v3, %v849_v48 }
  0x5a   : > { %v548_v62 = vrot.slane %v5998_v30, 1  ;;  %v550_v63 = vrot.slane %v6098_v17, 1  ;;  %v6116_v59 = vpack.c.bf16 %v850_v21, %v848_v58  ;;  %v894_v39 = vrot.slane %v5839_v27, 2 }
  0x5b   : > { %v854_v41 = vrot.slane %v5860_v57, 2  ;;  %v893_v13 = vsel %vm835_vm4, %v891_v53, %v892_v2  ;;  %v851_v34 = vrot.slane %v5856_v55, 2  ;;  %v852_v49 = vrot.slane %v5858_v56, 2  ;;  %5004 = vmatprep.subr.msk.bf16.mxu0 %vm5783_vm3, %v6109_v18 }
  0x5c   : > { %v895_v26 = vsel %vm835_vm4, %v892_v2, %v894_v39  ;;  %v896_v27 = vrot.slane %v5867_v61, 2  ;;  %v897_v57 = vrot.slane %v5879_v29, 2  ;;  %v899_v48 = vrot.slane %v5913_v47, 2  ;;  %5007 = vmatpush3.bf16.xpose.msk.msra.mxu0 %vm5783_vm3, %v6116_v59  ;;  %v6147_v47 = vld [vmem:[#allocation2 + $0x178] sm:$0x3] }
  0x5d   : > { %v504_v55 = vsel %vm476_vm2, %v502_v1, %v503_v60  ;;  %v506_v56 = vsel %vm476_vm2, %v503_v60, %v505_v24  ;;  %v6141_v35 = vpack.c.bf16 %v895_v26, %v893_v13  ;;  %v549_v61 = vsel %vm476_vm2, %v547_v11, %v548_v62 }
  0x5e   : > { %v551_v29 = vsel %vm476_vm2, %v548_v62, %v550_v63  ;;  %v853_v8 = vsel %vm835_vm4, %v851_v34, %v852_v49  ;;  %v855_v22 = vsel %vm835_vm4, %v852_v49, %v854_v41  ;;  %v6154_v1 = vpack.c.bf16 %v506_v56, %v504_v55 }
  0x5f   : > { %4647 = vmatpush3.bf16.xpose.msk.msra.mxu1 %vm5783_vm3, %v6042_v10  ;;  %5010 = vmatprep.subr.msk.bf16.mxu0 %vm5783_vm3, %v6141_v35  ;;  %v898_v60 = vsel %vm835_vm4, %v896_v27, %v897_v57  ;;  %v900_v24 = vsel %vm835_vm4, %v897_v57, %v899_v48  ;;  %v6158_v11 = vpack.c.bf16 %v551_v29, %v549_v61  ;;  %v507_v3 = vrot.slane %v6028_v14, 1 }
  0x60   : > { %4650 = vmatprep.subr.msk.bf16.mxu1 %vm5783_vm3, %v6044_v33  ;;  %v508_v45 = vrot.slane %v6036_v16, 1  ;;  %v510_v52 = vrot.slane %v6145_v44, 1  ;;  %v552_v53 = vrot.slane %v6038_v6, 1  ;;  %v553_v58 = vrot.slane %v6040_v7, 1 }
  0x61   : > { %v555_v21 = vrot.slane %v6147_v47, 1  ;;  %v6166_v2 = vpack.c.bf16 %v855_v22, %v853_v8  ;;  %v859_v62 = vrot.slane %v5944_v5, 2  ;;  %v6169_v63 = vpack.c.bf16 %v900_v24, %v898_v60 }
  0x62   : > { %v856_v39 = vrot.slane %v5915_v40, 2  ;;  %v857_v41 = vrot.slane %v5932_v15, 2  ;;  %v901_v13 = vrot.slane %v5946_v4, 2  ;;  %v902_v34 = vrot.slane %v5955_v23, 2  ;;  %v396_v23 = vld [vmem:[#allocation2 + $0xb8] sm:$0x3] }
  0x63   : > { %v904_v49 = vrot.slane %v5957_v20, 2  ;;  %v509_v5 = vsel %vm476_vm2, %v507_v3, %v508_v45  ;;  %v511_v15 = vsel %vm476_vm2, %v508_v45, %v510_v52  ;;  %v554_v4 = vsel %vm476_vm2, %v552_v53, %v553_v58 }
  0x64   : > { %5013 = vmatpush3.bf16.xpose.msk.msra.mxu0 %vm5783_vm3, %v6166_v2  ;;  %v556_v40 = vsel %vm476_vm2, %v553_v58, %v555_v21  ;;  %v858_v20 = vsel %vm835_vm4, %v856_v39, %v857_v41  ;;  %v860_v26 = vsel %vm835_vm4, %v857_v41, %v859_v62  ;;  %v6194_v27 = vpack.c.bf16 %v511_v15, %v509_v5  ;;  %v7919_v15 = vld [vmem:[#allocation10_spill] sm:$0xff] }
  0x65   : > { %5016 = vmatprep.subr.msk.bf16.mxu0 %vm5783_vm3, %v6169_v63  ;;  %v903_v57 = vsel %vm835_vm4, %v901_v13, %v902_v34  ;;  %v905_v48 = vsel %vm835_vm4, %v902_v34, %v904_v49  ;;  %v6198_v55 = vpack.c.bf16 %v556_v40, %v554_v4  ;;  %v512_v56 = vrot.slane %v6046_v42, 1  ;;  %v427_v49 = vld [vmem:[%s7776_s1] sm:$0xff] }
  0x66   : > { %v513_v61 = vrot.slane %v6048_v19, 1  ;;  %v515_v29 = vrot.slane %v396_v23, 1  ;;  %v6202_v8 = vpack.c.bf16 %v860_v26, %v858_v20  ;;  %v864_v22 = vrot.slane %v6026_v51, 2 }
  0x67   : > { %4653 = vmatpush3.bf16.xpose.msk.msra.mxu1 %vm5783_vm3, %v6154_v1  ;;  %v6205_v60 = vpack.c.bf16 %v905_v48, %v903_v57  ;;  %v861_v24 = vrot.slane %v5977_v28, 2  ;;  %v862_v3 = vrot.slane %v5979_v25, 2  ;;  %v906_v45 = vrot.slane %v5996_v54, 2  ;;  %v7921_v57 = vld [vmem:[#allocation25_spill] sm:$0xff]  ;;  %v7924_v48 = vld [vmem:[#allocation44_spill] sm:$0xff] }
  0x68   : > { %4656 = vmatprep.subr.msk.bf16.mxu1 %vm5783_vm3, %v6158_v11  ;;  %v907_v52 = vrot.slane %v5998_v30, 2  ;;  %v909_v53 = vrot.slane %v6098_v17, 2  ;;  %v514_v25 = vsel %vm476_vm2, %v512_v56, %v513_v61  ;;  %v516_v28 = vsel %vm476_vm2, %v513_v61, %v515_v29  ;;  %v7925_v56 = vld [vmem:[#allocation45_spill] sm:$0xff]  ;;  %v7926_v61 = vld [vmem:[#allocation46_spill] sm:$0xff]  ;;  %v7927_v29 = vld [vmem:[#allocation47_spill] sm:$0xff] }
  0x69   : > { %v863_v30 = vsel %vm835_vm4, %v861_v24, %v862_v3  ;;  %v865_v54 = vsel %vm835_vm4, %v862_v3, %v864_v22  ;;  %v6228_v51 = vpack.c.bf16 %v516_v28, %v514_v25  ;;  %v6234_v21 = vpack.c.bf16 %v5768_v32, %v5766_v31  ;;  %v7928_v22 = vld [vmem:[#allocation48_spill] sm:$0xff]  ;;  %v7929_v24 = vld [vmem:[#allocation49_spill] sm:$0xff]  ;;  %v7930_v3 = vld [vmem:[#allocation50_spill] sm:$0xff] }
  0x6a   : > { %v908_v17 = vsel %vm835_vm4, %v906_v45, %v907_v52  ;;  %v910_v58 = vsel %vm835_vm4, %v907_v52, %v909_v53  ;;  %v6236_v62 = vpack.c.bf16 %v865_v54, %v863_v30  ;;  %v869_v41 = vrot.slane %v6145_v44, 2  ;;  %v7931_v45 = vld [vmem:[#allocation51_spill] sm:$0xff]  ;;  %v6326_v52 = vld [vmem:[%s5657_s29 + $0xf0] sm:$0xff]  ;;  %v7932_v25 = vld [vmem:[#allocation53_spill] sm:$0xff] }
  0x6b   : > { %v6238_v39 = vpack.c.bf16 %v910_v58, %v908_v17  ;;  %v866_v13 = vrot.slane %v6028_v14, 2  ;;  %v867_v34 = vrot.slane %v6036_v16, 2  ;;  %v911_v31 = vrot.slane %v6038_v6, 2  ;;  %v6329_v53 = vld [vmem:[%s5657_s29 + $0xf8] sm:$0xff]  ;;  %371 = vst.msk [vmem:[#allocation2 + $0x181] sm:$0xff] %vm284_vm0, %v6326_v52  ;;  %v7933_v28 = vld [vmem:[#allocation54_spill] sm:$0xff]  ;;  %s251_s29 = scalar_lea.vmem %s7781_s6, %s3922_s26 }
  0x6c   : > { %5019 = vmatpush3.bf16.xpose.msk.msra.mxu0 %vm5783_vm3, %v6202_v8  ;;  %v912_v32 = vrot.slane %v6040_v7, 2  ;;  %v914_v44 = vrot.slane %v6147_v47, 2  ;;  %v874_v47 = vrot.slane %v396_v23, 2  ;;  %v7920_v4 = vpack.c.bf16 %v5685_v9, %v7919_v15  ;;  %v7923_v23 = vld [vmem:[#allocation43_spill] sm:$0xff]  ;;  %372 = vst.msk [vmem:[#allocation2 + $0x189] sm:$0xff] %vm284_vm0, %v6329_v53  ;;  %v3342_v54 = vld [vmem:[%s7776_s1 + $0x10] sm:$0xff] }
  0x6d   : > { %5022 = vmatprep.subr.msk.bf16.mxu0 %vm5783_vm3, %v6205_v60  ;;  %v868_v14 = vsel %vm835_vm4, %v866_v13, %v867_v34  ;;  %v870_v16 = vsel %vm835_vm4, %v867_v34, %v869_v41  ;;  %v871_v20 = vrot.slane %v6046_v42, 2  ;;  %v872_v26 = vrot.slane %v6048_v19, 2  ;;  %v7922_v19 = vld [vmem:[#allocation42_spill] sm:$0xff]  ;;  %v7934_v30 = vld [vmem:[#allocation55_spill] sm:$0xff]  ;;  %v7939_v15 = vld [vmem:[#allocation40_spill] sm:$0xff] }
  0x6e   : > { %v913_v5 = vsel %vm835_vm4, %v911_v31, %v912_v32  ;;  %v915_v6 = vsel %vm835_vm4, %v912_v32, %v914_v44  ;;  %v6267_v7 = vpack.c.bf16 %v870_v16, %v868_v14  ;;  %v7935_v17 = vpack.c.bf16 %v6072_v50, %v6069_v36  ;;  %v3376_v50 = vld [vmem:[%s7776_s1 + $0x18] sm:$0xff] }
  0x6f   : > { %4659 = vmatpush3.bf16.xpose.msk.msra.mxu1 %vm5783_vm3, %v6194_v27  ;;  %v6275_v40 = vpack.c.bf16 %v915_v6, %v913_v5  ;;  %v875_v9 = vsel %vm835_vm4, %v872_v26, %v874_v47  ;;  %v3410_v5 = vld [vmem:[%s7776_s1 + $0x20] sm:$0xff]  ;;  %v7937_v6 = vld [vmem:[#allocation29_spill] sm:$0xff] }
  0x70   : > { %4662 = vmatprep.subr.msk.bf16.mxu1 %vm5783_vm3, %v6198_v55  ;;  %v7938_v47 = vld [vmem:[#allocation32_spill] sm:$0xff] }
  0x72   : > { %v421_v36 = vld [vmem:[#allocation2 + $0x180] sm:$0xff] }
  0x73   : > { %v422_v58 = vld [vmem:[#allocation2 + $0x188] sm:$0xff]  ;;  %v1230_v41 = vrot.slane %v421_v36, 2  ;;  %v423_v31 = vld [vmem:[#allocation2 + $0x190] sm:$0x3] }
  0x74   : > { %5025 = vmatpush3.bf16.xpose.msk.msra.mxu0 %vm5783_vm3, %v6236_v62  ;;  %v1231_v13 = vrot.slane %v422_v58, 2  ;;  %v6443_v34 = vpack.c.bf16 %v422_v58, %v421_v36  ;;  %v1233_v44 = vrot.slane %v423_v31, 2 }
  0x75   : > { %5028 = vmatprep.subr.msk.bf16.mxu0 %vm5783_vm3, %v6238_v39 }
  0x76   : > { %v1232_v32 = vsel %vm835_vm4, %v1230_v41, %v1231_v13  ;;  %v1234_v14 = vsel %vm835_vm4, %v1231_v13, %v1233_v44  ;;  %v7966_v44 = vld [vmem:[#allocation20_spill] sm:$0xff] }
  0x77   : > { %4665 = vmatpush3.bf16.xpose.msk.msra.mxu1 %vm5783_vm3, %v6228_v51  ;;  %v4900_v16 = vpack.c.bf16 %v1234_v14, %v1232_v32  ;;  %v7965_v32 = vld [vmem:[#allocation19_spill] sm:$0xff] }
  0x78   : > { %4668 = vmatprep.subr.msk.bf16.mxu1 %vm5783_vm3, %v6234_v21  ;;  %v7967_v14 = vld [vmem:[#allocation23_spill] sm:$0xff] }
  0x7c   : > { %5031 = vmatpush3.bf16.xpose.msk.msra.mxu0 %vm5783_vm3, %v6267_v7 }
  0x7d   : > { %5034 = vmatprep.subr.msk.bf16.mxu0 %vm5783_vm3, %v6275_v40 }
  0x7e   : > { %3956 = vmatmul.mubr.msk.f32.vlgmr.msra.gmra.mrb[0].mxu1 %vm284_vm0, %v5589_v0  ;;  %v873_v0 = vsel %vm835_vm4, %v871_v20, %v872_v26  ;;  %v7941_v20 = vld [vmem:[#allocation52_spill] sm:$0xff]  ;;  %v1143_v26 = vrot.slane %v421_v36, 1  ;;  %v3444_v36 = vld [vmem:[%s7776_s1 + $0x28] sm:$0xff] }
  0x7f   : > { %4671 = vmatpush3.bf16.xpose.msk.msra.mxu1 %vm5783_vm3, %v7920_v4  ;;  %3989 = vmatprep.mubr.msk.f32.mxu1 %vm284_vm0, %v427_v49  ;;  %v6290_v42 = vpack.c.bf16 %v875_v9, %v873_v0  ;;  %v7940_v4 = vld [vmem:[#allocation41_spill] sm:$0xff]  ;;  %v1144_v0 = vrot.slane %v422_v58, 1  ;;  %v1146_v9 = vrot.slane %v423_v31, 1  ;;  %v3478_v31 = vld [vmem:[%s7776_s1 + $0x30] sm:$0xff] }
  0x80   : > { %4674 = vmatprep.subr.msk.bf16.mxu1 %vm5783_vm3, %v7921_v57 }
  0x84   : > { %5037 = vmatpush3.bf16.xpose.msk.msra.mxu0 %vm5783_vm3, %v6290_v42 }
  0x85   : > { %5040 = vmatprep.subr.msk.bf16.mxu0 %vm5783_vm3, %v4900_v16 }
  0x87   : > { %4677 = vmatpush3.bf16.xpose.msk.msra.mxu1 %vm5783_vm3, %v7922_v19 }
  0x88   : > { %4680 = vmatprep.subr.msk.bf16.mxu1 %vm5783_vm3, %v7923_v23 }
  0x8c   : > { %5043 = vmatpush3.bf16.xpose.msk.msra.mxu0 %vm5783_vm3, %v6088_v38 }
  0x8f   : > { %4683 = vmatpush3.bf16.xpose.msk.msra.mxu1 %vm5783_vm3, %v7924_v48 }
  0x90   : > { %4686 = vmatprep.subr.msk.bf16.mxu1 %vm5783_vm3, %v7925_v56 }
  0x97   : > { %4689 = vmatpush3.bf16.xpose.msk.msra.mxu1 %vm5783_vm3, %v7926_v61 }
  0x98   : > { %4692 = vmatprep.subr.msk.bf16.mxu1 %vm5783_vm3, %v7927_v29 }
  0x9f   : > { %4695 = vmatpush3.bf16.xpose.msk.msra.mxu1 %vm5783_vm3, %v7928_v22 }
  0xa0   : > { %4698 = vmatprep.subr.msk.bf16.mxu1 %vm5783_vm3, %v7929_v24 }
  0xa7   : > { %4701 = vmatpush3.bf16.xpose.msk.msra.mxu1 %vm5783_vm3, %v7930_v3 }
  0xa8   : > { %4704 = vmatprep.subr.msk.bf16.mxu1 %vm5783_vm3, %v7931_v45 }
  0xaf   : > { %4707 = vmatpush3.bf16.xpose.msk.msra.mxu1 %vm5783_vm3, %v7932_v25 }
  0xb0   : > { %4710 = vmatprep.subr.msk.bf16.mxu1 %vm5783_vm3, %v7933_v28 }
  0xb7   : > { %4713 = vmatpush3.bf16.xpose.msk.msra.mxu1 %vm5783_vm3, %v7934_v30 }
  0xb8   : > { %4716 = vmatprep.subr.msk.bf16.mxu1 %vm5783_vm3, %v6088_v38 }
  0xbe   : > { %3990 = vmatmul.mubr.msk.f32.vlgmr.msra.gmra.mrb[0].mxu1 %vm284_vm0, %v427_v49  ;;  %v7936_v49 = vld [vmem:[#allocation27_spill] sm:$0xff] }
  0xbf   : > { %4719 = vmatpush3.bf16.xpose.msk.msra.mxu1 %vm5783_vm3, %v7935_v17  ;;  %4023 = vmatprep.mubr.msk.f32.mxu1 %vm284_vm0, %v3342_v54 }
  0xc0   : > { %4722 = vmatprep.subr.msk.bf16.mxu1 %vm5783_vm3, %v6093_v12 }
  0xc7   : > { %4725 = vmatpush3.bf16.xpose.msk.msra.mxu1 %vm5783_vm3, %v6104_v46 }
  0xc8   : > { %4728 = vmatprep.subr.msk.bf16.mxu1 %vm5783_vm3, %v6109_v18 }
  0xcf   : > { %4731 = vmatpush3.bf16.xpose.msk.msra.mxu1 %vm5783_vm3, %v6116_v59 }
  0xd0   : > { %4734 = vmatprep.subr.msk.bf16.mxu1 %vm5783_vm3, %v6141_v35 }
  0xd7   : > { %4737 = vmatpush3.bf16.xpose.msk.msra.mxu1 %vm5783_vm3, %v6166_v2 }
  0xd8   : > { %4740 = vmatprep.subr.msk.bf16.mxu1 %vm5783_vm3, %v6169_v63 }
  0xdf   : > { %4743 = vmatpush3.bf16.xpose.msk.msra.mxu1 %vm5783_vm3, %v6202_v8 }
  0xe0   : > { %4746 = vmatprep.subr.msk.bf16.mxu1 %vm5783_vm3, %v6205_v60 }
  0xe7   : > { %4749 = vmatpush3.bf16.xpose.msk.msra.mxu1 %vm5783_vm3, %v6236_v62 }
  0xe8   : > { %4752 = vmatprep.subr.msk.bf16.mxu1 %vm5783_vm3, %v6238_v39 }
  0xef   : > { %4755 = vmatpush3.bf16.xpose.msk.msra.mxu1 %vm5783_vm3, %v6267_v7 }
  0xf0   : > { %4758 = vmatprep.subr.msk.bf16.mxu1 %vm5783_vm3, %v6275_v40 }
  0xf7   : > { %4761 = vmatpush3.bf16.xpose.msk.msra.mxu1 %vm5783_vm3, %v6290_v42 }
  0xf8   : > { %4764 = vmatprep.subr.msk.bf16.mxu1 %vm5783_vm3, %v7921_v57 }
  0xfe   : > { %4024 = vmatmul.mubr.msk.f32.vlgmr.msra.gmra.mrb[0].mxu1 %vm284_vm0, %v3342_v54  ;;  %v1147_v54 = vsel %vm476_vm2, %v1144_v0, %v1146_v9 }
  0xff   : > { %4767 = vmatpush3.bf16.xpose.msk.msra.mxu1 %vm5783_vm3, %v7922_v19  ;;  %4057 = vmatprep.mubr.msk.f32.mxu1 %vm284_vm0, %v3376_v50  ;;  %v1145_v19 = vsel %vm476_vm2, %v1143_v26, %v1144_v0 }
 0x100   : > { %4770 = vmatprep.subr.msk.bf16.mxu1 %vm5783_vm3, %v7923_v23  ;;  %v6507_v17 = vpack.c.bf16 %v1147_v54, %v1145_v19  ;;  %v6891_v54 = vld [vmem:[%s7779_s4 + $0x8] sm:$0xff] }
 0x107   : > { %4773 = vmatpush3.bf16.xpose.msk.msra.mxu1 %vm5783_vm3, %v7924_v48 }
 0x108   : > { %4776 = vmatprep.subr.msk.bf16.mxu1 %vm5783_vm3, %v7925_v56 }
 0x10f   : > { %4779 = vmatpush3.bf16.xpose.msk.msra.mxu1 %vm5783_vm3, %v7926_v61 }
 0x110   : > { %4782 = vmatprep.subr.msk.bf16.mxu1 %vm5783_vm3, %v7927_v29 }
 0x117   : > { %4785 = vmatpush3.bf16.xpose.msk.msra.mxu1 %vm5783_vm3, %v7928_v22 }
 0x118   : > { %4788 = vmatprep.subr.msk.bf16.mxu1 %vm5783_vm3, %v7929_v24 }
 0x11f   : > { %4791 = vmatpush3.bf16.xpose.msk.msra.mxu1 %vm5783_vm3, %v7930_v3 }
 0x120   : > { %4794 = vmatprep.subr.msk.bf16.mxu1 %vm5783_vm3, %v7931_v45 }
 0x127   : > { %4797 = vmatpush3.bf16.xpose.msk.msra.mxu1 %vm5783_vm3, %v7932_v25 }
 0x128   : > { %4800 = vmatprep.subr.msk.bf16.mxu1 %vm5783_vm3, %v7933_v28 }
 0x12f   : > { %4803 = vmatpush3.bf16.xpose.msk.msra.mxu1 %vm5783_vm3, %v7934_v30 }
 0x130   : > { %4806 = vmatprep.subr.msk.bf16.mxu1 %vm5783_vm3, %v6443_v34 }
 0x137   : > { %4809 = vmatpush3.bf16.xpose.msk.msra.mxu1 %vm5783_vm3, %v6234_v21 }
 0x138   : > { %4812 = vmatprep.subr.msk.bf16.mxu1 %vm5783_vm3, %v7936_v49 }
 0x13e   : > { %4058 = vmatmul.mubr.msk.f32.vlgmr.msra.gmra.mrb[0].mxu1 %vm284_vm0, %v3376_v50  ;;  %v7942_v50 = vld [vmem:[#allocation26_spill] sm:$0xff] }
 0x13f   : > { %4815 = vmatpush3.bf16.xpose.msk.msra.mxu1 %vm5783_vm3, %v7937_v6  ;;  %4091 = vmatprep.mubr.msk.f32.mxu1 %vm284_vm0, %v3410_v5  ;;  %v7971_v6 = vld [vmem:[#allocation36_spill] sm:$0xff] }
 0x140   : > { %4818 = vmatprep.subr.msk.bf16.mxu1 %vm5783_vm3, %v7938_v47 }
 0x147   : > { %4821 = vmatpush3.bf16.xpose.msk.msra.mxu1 %vm5783_vm3, %v7939_v15 }
 0x148   : > { %4824 = vmatprep.subr.msk.bf16.mxu1 %vm5783_vm3, %v7940_v4 }
 0x14f   : > { %4827 = vmatpush3.bf16.xpose.msk.msra.mxu1 %vm5783_vm3, %v6032_v43 }
 0x150   : > { %4830 = vmatprep.subr.msk.bf16.mxu1 %vm5783_vm3, %v7941_v20 }
 0x157   : > { %4833 = vmatpush3.bf16.xpose.msk.msra.mxu1 %vm5783_vm3, %v6042_v10 }
 0x158   : > { %4836 = vmatprep.subr.msk.bf16.mxu1 %vm5783_vm3, %v6044_v33 }
 0x15f   : > { %4839 = vmatpush3.bf16.xpose.msk.msra.mxu1 %vm5783_vm3, %v6154_v1 }
 0x160   : > { %4842 = vmatprep.subr.msk.bf16.mxu1 %vm5783_vm3, %v6158_v11 }
 0x167   : > { %4845 = vmatpush3.bf16.xpose.msk.msra.mxu1 %vm5783_vm3, %v6194_v27 }
 0x168   : > { %4848 = vmatprep.subr.msk.bf16.mxu1 %vm5783_vm3, %v6198_v55 }
 0x16f   : > { %4851 = vmatpush3.bf16.xpose.msk.msra.mxu1 %vm5783_vm3, %v6228_v51 }
 0x170   : > { %4854 = vmatprep.subr.msk.bf16.mxu1 %vm5783_vm3, %v6507_v17 }
 0x177   : > { %4857 = vmatpush3.bf16.xpose.msk.msra.mxu1 %vm5783_vm3, %v7942_v50 }
 0x178   : > { %4860 = vmatprep.subr.msk.bf16.mxu1 %vm5783_vm3, %v6093_v12 }
 0x17e   : > { %4092 = vmatmul.mubr.msk.f32.vlgmr.msra.gmra.mrb[0].mxu1 %vm284_vm0, %v3410_v5  ;;  %v7970_v5 = vld [vmem:[#allocation33_spill] sm:$0xff] }
 0x17f   : > { %4863 = vmatpush3.bf16.xpose.msk.msra.mxu1 %vm5783_vm3, %v6104_v46  ;;  %4125 = vmatprep.mubr.msk.f32.mxu1 %vm284_vm0, %v3444_v36  ;;  %v424_v46 = vld [vmem:[#allocation2 + $0x198] sm:$0xff] }
 0x180   : > { %4866 = vmatprep.subr.msk.bf16.mxu1 %vm5783_vm3, %v6109_v18  ;;  %v425_v18 = vld [vmem:[#allocation2 + $0x1a0] sm:$0xff] }
 0x187   : > { %4869 = vmatpush3.bf16.xpose.msk.msra.mxu1 %vm5783_vm3, %v6116_v59  ;;  %v1402_v59 = vrot.slane %v424_v46, 1 }
 0x188   : > { %4872 = vmatprep.subr.msk.bf16.mxu1 %vm5783_vm3, %v6141_v35  ;;  %v1403_v35 = vrot.slane %v425_v18, 1 }
 0x18f   : > { %4875 = vmatpush3.bf16.xpose.msk.msra.mxu1 %vm5783_vm3, %v6166_v2  ;;  %v1489_v2 = vrot.slane %v424_v46, 2 }
 0x190   : > { %4878 = vmatprep.subr.msk.bf16.mxu1 %vm5783_vm3, %v6169_v63  ;;  %v1490_v63 = vrot.slane %v425_v18, 2 }
 0x197   : > { %4881 = vmatpush3.bf16.xpose.msk.msra.mxu1 %vm5783_vm3, %v6202_v8  ;;  %v426_v8 = vld [vmem:[#allocation2 + $0x1a8] sm:$0x3] }
 0x198   : > { %4884 = vmatprep.subr.msk.bf16.mxu1 %vm5783_vm3, %v6205_v60  ;;  %v1404_v60 = vsel %vm476_vm2, %v1402_v59, %v1403_v35 }
 0x19f   : > { %4887 = vmatpush3.bf16.xpose.msk.msra.mxu1 %vm5783_vm3, %v6236_v62  ;;  %v1405_v62 = vrot.slane %v426_v8, 1 }
 0x1a0   : > { %4890 = vmatprep.subr.msk.bf16.mxu1 %vm5783_vm3, %v6238_v39  ;;  %v1491_v39 = vsel %vm835_vm4, %v1489_v2, %v1490_v63 }
 0x1a7   : > { %4893 = vmatpush3.bf16.xpose.msk.msra.mxu1 %vm5783_vm3, %v6267_v7  ;;  %v1492_v7 = vrot.slane %v426_v8, 2 }
 0x1a8   : > { %4896 = vmatprep.subr.msk.bf16.mxu1 %vm5783_vm3, %v6275_v40  ;;  %v1406_v40 = vsel %vm476_vm2, %v1403_v35, %v1405_v62 }
 0x1a9   : > { %v1493_v58 = vsel %vm835_vm4, %v1490_v63, %v1492_v7  ;;  %v4996_v41 = vpack.c.bf16 %v1406_v40, %v1404_v60 }
 0x1aa   : > { %v5044_v13 = vpack.c.bf16 %v1493_v58, %v1491_v39 }
 0x1ac   : > { %5046 = vmatprep.subr.msk.bf16.mxu0 %vm5783_vm3, %v5044_v13 }
 0x1ad   : > { %5049 = vmatpush3.bf16.xpose.msk.msra.mxu0 %vm5783_vm3, %v6093_v12  ;;  %v3512_v12 = vld [vmem:[%s7776_s1 + $0x38] sm:$0xff] }
 0x1af   : > { %4899 = vmatpush3.bf16.xpose.msk.msra.mxu1 %vm5783_vm3, %v6290_v42  ;;  %v3546_v42 = vld [vmem:[%s7776_s1 + $0x40] sm:$0xff] }
 0x1b0   : > { %4902 = vmatprep.subr.msk.bf16.mxu1 %vm5783_vm3, %v4900_v16  ;;  %4227 = vmatprep.mubr.msk.f32.mxu0 %vm284_vm0, %v3546_v42  ;;  %v7968_v16 = vld [vmem:[#allocation24_spill] sm:$0xff] }
 0x1b4   : > { %4228 = vmatmul.mubr.msk.f32.vlgmr.msra.gmra.mrb[0].mxu0 %vm284_vm0, %v3546_v42 }
 0x1b5   : > { %4328 = vmatprep.mubr.msk.f32.mxu0 %vm284_vm0, %v6891_v54 }
 0x1b7   : > { %4905 = vmatpush3.bf16.xpose.msk.msra.mxu1 %vm5783_vm3, %v6088_v38  ;;  %v4948_v38 = vpack.c.bf16 %v425_v18, %v424_v46 }
 0x1b8   : > { %4908 = vmatprep.subr.msk.bf16.mxu1 %vm5783_vm3, %v7923_v23  ;;  %v7952_v23 = vld [vmem:[#allocation30_spill] sm:$0xff] }
 0x1be   : > { %4126 = vmatmul.mubr.msk.f32.vlgmr.msra.gmra.mrb[0].mxu1 %vm284_vm0, %v3444_v36 }
 0x1bf   : > { %4911 = vmatpush3.bf16.xpose.msk.msra.mxu1 %vm5783_vm3, %v7924_v48  ;;  %4159 = vmatprep.mubr.msk.f32.mxu1 %vm284_vm0, %v3478_v31  ;;  %v7953_v48 = vld [vmem:[#allocation34_spill] sm:$0xff] }
 0x1c0   : > { %4914 = vmatprep.subr.msk.bf16.mxu1 %vm5783_vm3, %v7925_v56  ;;  %v7954_v56 = vld [vmem:[#allocation35_spill] sm:$0xff] }
 0x1c7   : > { %4917 = vmatpush3.bf16.xpose.msk.msra.mxu1 %vm5783_vm3, %v7926_v61  ;;  %v7955_v61 = vld [vmem:[#allocation38_spill] sm:$0xff] }
 0x1c8   : > { %4920 = vmatprep.subr.msk.bf16.mxu1 %vm5783_vm3, %v7927_v29  ;;  %v7956_v29 = vld [vmem:[#allocation39_spill] sm:$0xff] }
 0x1cf   : > { %4923 = vmatpush3.bf16.xpose.msk.msra.mxu1 %vm5783_vm3, %v7928_v22  ;;  %v7957_v22 = vld [vmem:[#allocation4_spill] sm:$0xff] }
 0x1d0   : > { %4926 = vmatprep.subr.msk.bf16.mxu1 %vm5783_vm3, %v7929_v24  ;;  %v7958_v24 = vld [vmem:[#allocation5_spill] sm:$0xff] }
 0x1d7   : > { %4929 = vmatpush3.bf16.xpose.msk.msra.mxu1 %vm5783_vm3, %v7930_v3  ;;  %v7959_v3 = vld [vmem:[#allocation6_spill] sm:$0xff] }
 0x1d8   : > { %4932 = vmatprep.subr.msk.bf16.mxu1 %vm5783_vm3, %v7931_v45  ;;  %v7960_v45 = vld [vmem:[#allocation7_spill] sm:$0xff] }
 0x1df   : > { %4935 = vmatpush3.bf16.xpose.msk.msra.mxu1 %vm5783_vm3, %v7932_v25  ;;  %v7961_v25 = vld [vmem:[#allocation11_spill] sm:$0xff] }
 0x1e0   : > { %4938 = vmatprep.subr.msk.bf16.mxu1 %vm5783_vm3, %v7933_v28  ;;  %v7962_v28 = vld [vmem:[#allocation12_spill] sm:$0xff] }
 0x1e7   : > { %4941 = vmatpush3.bf16.xpose.msk.msra.mxu1 %vm5783_vm3, %v7934_v30  ;;  %v7963_v30 = vld [vmem:[#allocation15_spill] sm:$0xff] }
 0x1e8   : > { %4944 = vmatprep.subr.msk.bf16.mxu1 %vm5783_vm3, %v6443_v34  ;;  %v7964_v34 = vld [vmem:[#allocation16_spill] sm:$0xff] }
 0x1ef   : > { %4947 = vmatpush3.bf16.xpose.msk.msra.mxu1 %vm5783_vm3, %v6234_v21  ;;  %v7950_v21 = vld [vmem:[#allocation22_spill] sm:$0xff] }
 0x1f0   : > { %4950 = vmatprep.subr.msk.bf16.mxu1 %vm5783_vm3, %v4948_v38 }
 0x1f7   : > { %4953 = vmatpush3.bf16.xpose.msk.msra.mxu1 %vm5783_vm3, %v7921_v57  ;;  %v7951_v57 = vld [vmem:[#allocation28_spill] sm:$0xff] }
 0x1f8   : > { %4956 = vmatprep.subr.msk.bf16.mxu1 %vm5783_vm3, %v7938_v47  ;;  %v7972_v47 = vld [vmem:[#allocation37_spill] sm:$0xff] }
 0x1fe   : > { %4160 = vmatmul.mubr.msk.f32.vlgmr.msra.gmra.mrb[0].mxu1 %vm284_vm0, %v3478_v31 }
 0x1ff   : > { %4959 = vmatpush3.bf16.xpose.msk.msra.mxu1 %vm5783_vm3, %v7939_v15  ;;  %4193 = vmatprep.mubr.msk.f32.mxu1 %vm284_vm0, %v3512_v12 }
 0x200   : > { %4962 = vmatprep.subr.msk.bf16.mxu1 %vm5783_vm3, %v7940_v4 }
 0x207   : > { %4965 = vmatpush3.bf16.xpose.msk.msra.mxu1 %vm5783_vm3, %v6032_v43  ;;  %v1577_v43 = vld [vmem:[%s7777_s2] sm:$0xf] }
 0x208   : > { %4968 = vmatprep.subr.msk.bf16.mxu1 %vm5783_vm3, %v7941_v20  ;;  %v6763_v20 = vld [vmem:[%s7778_s3] ss:$0 sm:$0xff] }
 0x209   : > { %1913 = vst.msk [vmem:[#allocation3 + $0x20] sm:$0xff] %vm284_vm0, %v6763_v20  ;;  %1909 = vst.msk [vmem:[#allocation3] sm:$0xff] %vm284_vm0, %v6763_v20 }
 0x20a   : > { %1914 = vst.msk [vmem:[#allocation3 + $0x28] sm:$0x3] %vm287_vm1, %v6763_v20  ;;  %1911 = vst.msk [vmem:[#allocation3 + $0x10] sm:$0x3] %vm287_vm1, %v6763_v20 }
 0x20b   : > { %1910 = vst.msk [vmem:[#allocation3 + $0x8] sm:$0xff] %vm284_vm0, %v6763_v20  ;;  %1912 = vst.msk [vmem:[#allocation3 + $0x18] sm:$0xff] %vm284_vm0, %v6763_v20 }
 0x20c   : > { %1915 = vst.msk [vmem:[#allocation3 + $0x30] sm:$0xff] %vm284_vm0, %v6763_v20  ;;  %1916 = vst.msk [vmem:[#allocation3 + $0x38] sm:$0xff] %vm284_vm0, %v6763_v20 }
 0x20d   : > { %1917 = vst.msk [vmem:[#allocation3 + $0x40] sm:$0x3] %vm287_vm1, %v6763_v20  ;;  %1920 = vst.msk [vmem:[#allocation3 + $0x58] sm:$0x3] %vm287_vm1, %v6763_v20 }
 0x20e   : > { %1918 = vst.msk [vmem:[#allocation3 + $0x48] sm:$0xff] %vm284_vm0, %v6763_v20  ;;  %1919 = vst.msk [vmem:[#allocation3 + $0x50] sm:$0xff] %vm284_vm0, %v6763_v20 }
 0x20f   : > { %4971 = vmatpush3.bf16.xpose.msk.msra.mxu1 %vm5783_vm3, %v6042_v10  ;;  %v7943_v10 = vld [vmem:[#allocation8_spill] sm:$0xff]  ;;  %1921 = vst.msk [vmem:[#allocation3 + $0x60] sm:$0xff] %vm284_vm0, %v6763_v20  ;;  %1922 = vst.msk [vmem:[#allocation3 + $0x68] sm:$0xff] %vm284_vm0, %v6763_v20 }
 0x210   : > { %4974 = vmatprep.subr.msk.bf16.mxu1 %vm5783_vm3, %v6044_v33  ;;  %v7944_v33 = vld [vmem:[#allocation9_spill] sm:$0xff]  ;;  %1923 = vst.msk [vmem:[#allocation3 + $0x70] sm:$0x3] %vm287_vm1, %v6763_v20  ;;  %1926 = vst.msk [vmem:[#allocation3 + $0x88] sm:$0x3] %vm287_vm1, %v6763_v20 }
 0x211   : > { %1924 = vst.msk [vmem:[#allocation3 + $0x78] sm:$0xff] %vm284_vm0, %v6763_v20  ;;  %1925 = vst.msk [vmem:[#allocation3 + $0x80] sm:$0xff] %vm284_vm0, %v6763_v20  ;;  %v6886_v19 = vld [vmem:[#allocation3 + $0x10] sm:$0x3] }
 0x212   : > { %1927 = vst.msk [vmem:[#allocation3 + $0x90] sm:$0xff] %vm284_vm0, %v6763_v20  ;;  %1928 = vst.msk [vmem:[#allocation3 + $0x98] sm:$0xff] %vm284_vm0, %v6763_v20  ;;  %v6880_v26 = vld [vmem:[#allocation3 + $0x8] sm:$0xff] }
 0x213   : > { %1929 = vst.msk [vmem:[#allocation3 + $0xa0] sm:$0x3] %vm287_vm1, %v6763_v20  ;;  %1932 = vst.msk [vmem:[#allocation3 + $0xb8] sm:$0x3] %vm287_vm1, %v6763_v20  ;;  %v2462_v9 = vrot.slane %v6880_v26, 2 }
 0x214   : > { %1930 = vst.msk [vmem:[#allocation3 + $0xa8] sm:$0xff] %vm284_vm0, %v6763_v20  ;;  %1931 = vst.msk [vmem:[#allocation3 + $0xb0] sm:$0xff] %vm284_vm0, %v6763_v20 }
 0x215   : > { %1933 = vst.msk [vmem:[#allocation3 + $0xc0] sm:$0xff] %vm284_vm0, %v6763_v20  ;;  %1934 = vst.msk [vmem:[#allocation3 + $0xc8] sm:$0xff] %vm284_vm0, %v6763_v20 }
 0x216   : > { %1935 = vst.msk [vmem:[#allocation3 + $0xd0] sm:$0x3] %vm287_vm1, %v6763_v20  ;;  %1938 = vst.msk [vmem:[#allocation3 + $0xe8] sm:$0x3] %vm287_vm1, %v6763_v20 }
 0x217   : > { %4977 = vmatpush3.bf16.xpose.msk.msra.mxu1 %vm5783_vm3, %v6154_v1  ;;  %v7945_v1 = vld [vmem:[#allocation13_spill] sm:$0xff]  ;;  %1936 = vst.msk [vmem:[#allocation3 + $0xd8] sm:$0xff] %vm284_vm0, %v6763_v20  ;;  %1937 = vst.msk [vmem:[#allocation3 + $0xe0] sm:$0xff] %vm284_vm0, %v6763_v20 }
 0x218   : > { %4980 = vmatprep.subr.msk.bf16.mxu1 %vm5783_vm3, %v6158_v11  ;;  %v7946_v11 = vld [vmem:[#allocation14_spill] sm:$0xff]  ;;  %1939 = vst.msk [vmem:[#allocation3 + $0xf0] sm:$0xff] %vm284_vm0, %v6763_v20  ;;  %1940 = vst.msk [vmem:[#allocation3 + $0xf8] sm:$0xff] %vm284_vm0, %v6763_v20 }
 0x219   : > { %1941 = vst.msk [vmem:[#allocation3 + $0x100] sm:$0x3] %vm287_vm1, %v6763_v20  ;;  %1944 = vst.msk [vmem:[#allocation3 + $0x118] sm:$0x3] %vm287_vm1, %v6763_v20 }
 0x21a   : > { %1942 = vst.msk [vmem:[#allocation3 + $0x108] sm:$0xff] %vm284_vm0, %v6763_v20  ;;  %1943 = vst.msk [vmem:[#allocation3 + $0x110] sm:$0xff] %vm284_vm0, %v6763_v20 }
 0x21b   : > { %1945 = vst.msk [vmem:[#allocation3 + $0x120] sm:$0xff] %vm284_vm0, %v6763_v20  ;;  %1946 = vst.msk [vmem:[#allocation3 + $0x128] sm:$0xff] %vm284_vm0, %v6763_v20 }
 0x21c   : > { %1947 = vst.msk [vmem:[#allocation3 + $0x130] sm:$0x3] %vm287_vm1, %v6763_v20  ;;  %1950 = vst.msk [vmem:[#allocation3 + $0x148] sm:$0x3] %vm287_vm1, %v6763_v20 }
 0x21d   : > { %1948 = vst.msk [vmem:[#allocation3 + $0x138] sm:$0xff] %vm284_vm0, %v6763_v20  ;;  %1949 = vst.msk [vmem:[#allocation3 + $0x140] sm:$0xff] %vm284_vm0, %v6763_v20 }
 0x21e   : > { %1951 = vst.msk [vmem:[#allocation3 + $0x150] sm:$0xff] %vm284_vm0, %v6763_v20  ;;  %1952 = vst.msk [vmem:[#allocation3 + $0x158] sm:$0xff] %vm284_vm0, %v6763_v20 }
 0x21f   : > { %4983 = vmatpush3.bf16.xpose.msk.msra.mxu1 %vm5783_vm3, %v6194_v27  ;;  %v7947_v27 = vld [vmem:[#allocation17_spill] sm:$0xff]  ;;  %1953 = vst.msk [vmem:[#allocation3 + $0x160] sm:$0x3] %vm287_vm1, %v6763_v20  ;;  %1956 = vst.msk [vmem:[#allocation3 + $0x178] sm:$0x3] %vm287_vm1, %v6763_v20 }
 0x220   : > { %4986 = vmatprep.subr.msk.bf16.mxu1 %vm5783_vm3, %v6198_v55  ;;  %v7948_v55 = vld [vmem:[#allocation18_spill] sm:$0xff]  ;;  %1954 = vst.msk [vmem:[#allocation3 + $0x168] sm:$0xff] %vm284_vm0, %v6763_v20  ;;  %1955 = vst.msk [vmem:[#allocation3 + $0x170] sm:$0xff] %vm284_vm0, %v6763_v20 }
 0x221   : > { %1957 = vst.msk [vmem:[#allocation3 + $0x180] sm:$0xff] %vm284_vm0, %v6763_v20  ;;  %1958 = vst.msk [vmem:[#allocation3 + $0x188] sm:$0xff] %vm284_vm0, %v6763_v20 }
 0x222   : > { %1959 = vst.msk [vmem:[#allocation3 + $0x190] sm:$0x3] %vm287_vm1, %v6763_v20  ;;  %1962 = vst.msk [vmem:[#allocation3 + $0x1a8] sm:$0x3] %vm287_vm1, %v6763_v20 }
 0x223   : > { %1960 = vst.msk [vmem:[#allocation3 + $0x198] sm:$0xff] %vm284_vm0, %v6763_v20  ;;  %1961 = vst.msk [vmem:[#allocation3 + $0x1a0] sm:$0xff] %vm284_vm0, %v6763_v20 }
 0x227   : > { %4989 = vmatpush3.bf16.xpose.msk.msra.mxu1 %vm5783_vm3, %v6228_v51  ;;  %v7949_v51 = vld [vmem:[#allocation21_spill] sm:$0xff] }
 0x228   : > { %4992 = vmatprep.subr.msk.bf16.mxu1 %vm5783_vm3, %v6507_v17  ;;  %v2464_v17 = vrot.slane %v6886_v19, 2 }
 0x22a   : > { %v6900_v36 = vsel %vm835_vm4, %v2462_v9, %v2464_v17 }
 0x22f   : > { %4995 = vmatpush3.bf16.xpose.msk.msra.mxu1 %vm5783_vm3, %v7942_v50 }
 0x230   : > { %4998 = vmatprep.subr.msk.bf16.mxu1 %vm5783_vm3, %v4996_v41 }
 0x237   : > { %5001 = vmatpush3.bf16.xpose.msk.msra.mxu1 %vm5783_vm3, %v7936_v49  ;;  %v7969_v49 = vld [vmem:[#allocation31_spill] sm:$0xff] }
 0x238   : > { %4568 = vmatprep.subr.msk.mxu1 %vm1680_vm5, %v1577_v43 }
 0x23e   : > { %4194 = vmatmul.mubr.msk.f32.vlgmr.msra.gmra.mrb[0].mxu1 %vm284_vm0, %v3512_v12 }
 0x23f   : > { %4569 = vmatpush3.msk.msra.mxu1 %vm1680_vm5, %v1577_v43  ;;  %4570 = vmatprep.mubr.msk.f32.mxu1 %vm284_vm0, %v7943_v10 }
 0x242   : > { %4571 = vmatmul.mubr.msk.f32.vlgmr.msra.gmra.mrb[2].mxu1 %vm284_vm0, %v7944_v33 }
 0x243   : > { %4573 = vmatprep.mubr.msk.f32.mxu1 %vm284_vm0, %v7945_v1 }
 0x246   : > { %4574 = vmatmul.mubr.msk.f32.gmra.mrb[4].mxu1 %vm284_vm0, %v7946_v11 }
 0x247   : > { %4576 = vmatprep.mubr.msk.f32.mxu1 %vm284_vm0, %v7947_v27 }
 0x24a   : > { %4577 = vmatmul.mubr.msk.f32.gmra.mrb[6].mxu1 %vm284_vm0, %v7948_v55 }
 0x24b   : > { %4579 = vmatprep.mubr.msk.f32.mxu1 %vm284_vm0, %v7949_v51 }
 0x24e   : > { %4580 = vmatmul.mubr.msk.f32.gmra.mrb[8].mxu1 %vm284_vm0, %v7950_v21 }
 0x24f   : > { %4582 = vmatprep.mubr.msk.f32.mxu1 %vm284_vm0, %v7951_v57 }
 0x252   : > { %4583 = vmatmul.mubr.msk.f32.gmra.mrb[10].mxu1 %vm284_vm0, %v7952_v23 }
 0x253   : > { %4585 = vmatprep.mubr.msk.f32.mxu1 %vm284_vm0, %v7953_v48 }
 0x256   : > { %4586 = vmatmul.mubr.msk.f32.gmra.mrb[12].mxu1 %vm284_vm0, %v7954_v56 }
 0x257   : > { %4588 = vmatprep.mubr.msk.f32.mxu1 %vm284_vm0, %v7955_v61 }
 0x25a   : > { %4589 = vmatmul.mubr.msk.f32.gmra.mrb[14].mxu1 %vm284_vm0, %v7956_v29 }
 0x25b   : > { %4591 = vmatprep.mubr.msk.f32.mxu1 %vm284_vm0, %v7957_v22 }
 0x25e   : > { %4592 = vmatmul.mubr.msk.f32.gmra.mrb[16].mxu1 %vm284_vm0, %v7958_v24 }
 0x25f   : > { %4594 = vmatprep.mubr.msk.f32.mxu1 %vm284_vm0, %v7959_v3 }
 0x262   : > { %4595 = vmatmul.mubr.msk.f32.gmra.mrb[18].mxu1 %vm284_vm0, %v7960_v45 }
 0x263   : > { %4597 = vmatprep.mubr.msk.f32.mxu1 %vm284_vm0, %v7961_v25 }
 0x266   : > { %4598 = vmatmul.mubr.msk.f32.gmra.mrb[20].mxu1 %vm284_vm0, %v7962_v28 }
 0x267   : > { %4600 = vmatprep.mubr.msk.f32.mxu1 %vm284_vm0, %v7963_v30 }
 0x26a   : > { %4601 = vmatmul.mubr.msk.f32.gmra.mrb[22].mxu1 %vm284_vm0, %v7964_v34 }
 0x26b   : > { %4603 = vmatprep.mubr.msk.f32.mxu1 %vm284_vm0, %v7965_v32 }
 0x26e   : > { %4604 = vmatmul.mubr.msk.f32.gmra.mrb[24].mxu1 %vm284_vm0, %v7966_v44 }
 0x26f   : > { %4606 = vmatprep.mubr.msk.f32.mxu1 %vm284_vm0, %v7967_v14 }
 0x272   : > { %4607 = vmatmul.mubr.msk.f32.gmra.mrb[26].mxu1 %vm284_vm0, %v7968_v16 }
 0x273   : > { %4609 = vmatprep.mubr.msk.f32.mxu1 %vm284_vm0, %v7969_v49 }
 0x276   : > { %4610 = vmatmul.mubr.msk.f32.gmra.mrb[28].mxu1 %vm284_vm0, %v7970_v5 }
 0x277   : > { %4612 = vmatprep.mubr.msk.f32.mxu1 %vm284_vm0, %v7971_v6 }
 0x27a   : > { %4613 = vmatmul.mubr.msk.f32.gmra.mrb[30].mxu1 %vm284_vm0, %v7972_v47 }
 0x27b   : > { %4615 = vmatprep.mubr.msk.f32.mxu1 %vm284_vm0, %v6326_v52  ;;  %v6876_v52 = vld [vmem:[%s7779_s4] sm:$0xff] }
 0x27e   : > { %4616 = vmatmul.mubr.msk.f32.gmra.mrb[32].mxu1 %vm284_vm0, %v6329_v53  ;;  %v6878_v53 = vld [vmem:[#allocation3] sm:$0xff] }
 0x27f   : > { %4294 = vmatprep.mubr.msk.f32.mxu1 %vm284_vm0, %v6876_v52  ;;  %v2461_v0 = vrot.slane %v6878_v53, 2 }
 0x281   : > { %v6897_v50 = vsel %vm835_vm4, %v2461_v0, %v2462_v9 }
 0x287   : > { %v6756_v15 = vpop.f32.mrb[0].mxu0 }
 0x288   : > { %v6758_v4 = vpop.f32.mrb[1].mxu0 }
 0x311   : > { %v1482_v18 = vpop.f32.mrb[0].mxu1 }
 0x312   : > { %v6905_v59 = vadd.f32 %v6756_v15, %v1482_v18  ;;  %v1484_v35 = vpop.f32.mrb[1].mxu1 }
 0x313   : > { %v6908_v2 = vadd.f32 %v6758_v4, %v1484_v35 }
 0x314   : > { %7973 = vst [vmem:[#allocation10_spill] sm:$0xff] %v6905_v59 }
 0x315   : > { %7974 = vst [vmem:[#allocation25_spill] sm:$0xff] %v6908_v2  ;;  %v4572_v63 = vpop.f32.mrb[2].mxu1 }
 0x316   : > { %v1756_v8 = vadd.f32 %v4572_v63, %v6763_v20  ;;  %v1750_v60 = vpop.f32.mrb[3].mxu1 }
 0x317   : > { %v1751_v62 = vadd.f32 %v6763_v20, %v1750_v60 }
 0x318   : > { %1965 = vst.msk [vmem:[#allocation3 + $0x21] sm:$0xff] %vm284_vm0, %v1756_v8 }
 0x319   : > { %1964 = vst.msk [vmem:[#allocation3 + $0x19] sm:$0xff] %vm284_vm0, %v1751_v62  ;;  %v4575_v39 = vpop.f32.mrb[4].mxu1 }
 0x31a   : > { %v1766_v7 = vadd.f32 %v4575_v39, %v6763_v20  ;;  %v1760_v40 = vpop.f32.mrb[5].mxu1 }
 0x31b   : > { %v1761_v58 = vadd.f32 %v6763_v20, %v1760_v40 }
 0x31c   : > { %1967 = vst.msk [vmem:[#allocation3 + $0x39] sm:$0xff] %vm284_vm0, %v1766_v7 }
 0x31d   : > { %1966 = vst.msk [vmem:[#allocation3 + $0x31] sm:$0xff] %vm284_vm0, %v1761_v58  ;;  %v4578_v41 = vpop.f32.mrb[6].mxu1 }
 0x31e   : > { %v1776_v13 = vadd.f32 %v4578_v41, %v6763_v20  ;;  %v1770_v42 = vpop.f32.mrb[7].mxu1 }
 0x31f   : > { %v1771_v31 = vadd.f32 %v6763_v20, %v1770_v42  ;;  %v6920_v38 = vld [vmem:[#allocation3 + $0x28] sm:$0x3] }
 0x320   : > { %1969 = vst.msk [vmem:[#allocation3 + $0x51] sm:$0xff] %vm284_vm0, %v1776_v13  ;;  %v6923_v12 = vld [vmem:[#allocation3 + $0x18] sm:$0xff]  ;;  %v6925_v43 = vld [vmem:[#allocation3 + $0x20] sm:$0xff]  ;;  %v2469_v10 = vrot.slane %v6920_v38, 2 }
 0x321   : > { %1968 = vst.msk [vmem:[#allocation3 + $0x49] sm:$0xff] %vm284_vm0, %v1771_v31  ;;  %v4581_v33 = vpop.f32.mrb[8].mxu1  ;;  %v2466_v1 = vrot.slane %v6923_v12, 2  ;;  %v2467_v55 = vrot.slane %v6925_v43, 2 }
 0x322   : > { %v1786_v11 = vadd.f32 %v4581_v33, %v6763_v20  ;;  %v1780_v27 = vpop.f32.mrb[9].mxu1 }
 0x323   : > { %v1781_v51 = vadd.f32 %v6763_v20, %v1780_v27  ;;  %v6933_v21 = vld [vmem:[#allocation3 + $0x40] sm:$0x3]  ;;  %v2468_v48 = vsel %vm835_vm4, %v2466_v1, %v2467_v55  ;;  %v2470_v56 = vsel %vm835_vm4, %v2467_v55, %v2469_v10 }
 0x324   : > { %1971 = vst.msk [vmem:[#allocation3 + $0x69] sm:$0xff] %vm284_vm0, %v1786_v11  ;;  %v6936_v57 = vld [vmem:[#allocation3 + $0x30] sm:$0xff]  ;;  %v6938_v23 = vld [vmem:[#allocation3 + $0x38] sm:$0xff]  ;;  %v6946_v45 = vpack.c.bf16 %v2470_v56, %v2468_v48  ;;  %v2474_v25 = vrot.slane %v6933_v21, 2 }
 0x325   : > { %1970 = vst.msk [vmem:[#allocation3 + $0x61] sm:$0xff] %vm284_vm0, %v1781_v51  ;;  %v4584_v61 = vpop.f32.mrb[10].mxu1  ;;  %v2471_v29 = vrot.slane %v6936_v57, 2  ;;  %v2472_v3 = vrot.slane %v6938_v23, 2 }
 0x326   : > { %v1796_v22 = vadd.f32 %v4584_v61, %v6763_v20  ;;  %v1790_v24 = vpop.f32.mrb[11].mxu1 }
 0x327   : > { %v1791_v28 = vadd.f32 %v6763_v20, %v1790_v24  ;;  %v6950_v30 = vld [vmem:[#allocation3 + $0x58] sm:$0x3]  ;;  %v2473_v44 = vsel %vm835_vm4, %v2471_v29, %v2472_v3  ;;  %v2475_v14 = vsel %vm835_vm4, %v2472_v3, %v2474_v25 }
 0x328   : > { %1973 = vst.msk [vmem:[#allocation3 + $0x81] sm:$0xff] %vm284_vm0, %v1796_v22  ;;  %v6953_v34 = vld [vmem:[#allocation3 + $0x48] sm:$0xff]  ;;  %v6955_v32 = vld [vmem:[#allocation3 + $0x50] sm:$0xff]  ;;  %v6963_v15 = vpack.c.bf16 %v2475_v14, %v2473_v44  ;;  %v2479_v4 = vrot.slane %v6950_v30, 2 }
 0x329   : > { %1972 = vst.msk [vmem:[#allocation3 + $0x79] sm:$0xff] %vm284_vm0, %v1791_v28  ;;  %v4587_v16 = vpop.f32.mrb[12].mxu1  ;;  %v2476_v49 = vrot.slane %v6953_v34, 2  ;;  %v2477_v47 = vrot.slane %v6955_v32, 2 }
 0x32a   : > { %v1806_v5 = vadd.f32 %v4587_v16, %v6763_v20  ;;  %v1800_v6 = vpop.f32.mrb[13].mxu1 }
 0x32b   : > { %v1801_v0 = vadd.f32 %v6763_v20, %v1800_v6  ;;  %v6967_v9 = vld [vmem:[#allocation3 + $0x70] sm:$0x3]  ;;  %v2478_v35 = vsel %vm835_vm4, %v2476_v49, %v2477_v47  ;;  %v2480_v63 = vsel %vm835_vm4, %v2477_v47, %v2479_v4  ;;  %v2239_v4 = vrot.slane %v6878_v53, 1 }
 0x32c   : > { %1975 = vst.msk [vmem:[#allocation3 + $0x99] sm:$0xff] %vm284_vm0, %v1806_v5  ;;  %v6970_v17 = vld [vmem:[#allocation3 + $0x60] sm:$0xff]  ;;  %v6972_v18 = vld [vmem:[#allocation3 + $0x68] sm:$0xff]  ;;  %v6980_v40 = vpack.c.bf16 %v2480_v63, %v2478_v35  ;;  %v2484_v58 = vrot.slane %v6967_v9, 2  ;;  %v2242_v35 = vrot.slane %v6886_v19, 1 }
 0x32d   : > { %1974 = vst.msk [vmem:[#allocation3 + $0x91] sm:$0xff] %vm284_vm0, %v1801_v0  ;;  %v4590_v8 = vpop.f32.mrb[14].mxu1  ;;  %v2481_v60 = vrot.slane %v6970_v17, 2  ;;  %v2482_v7 = vrot.slane %v6972_v18, 2  ;;  %v2240_v0 = vrot.slane %v6880_v26, 1 }
 0x32e   : > { %v1816_v62 = vadd.f32 %v4590_v8, %v6763_v20  ;;  %v1810_v39 = vpop.f32.mrb[15].mxu1 }
 0x32f   : > { %v1811_v41 = vadd.f32 %v6763_v20, %v1810_v39  ;;  %v6984_v13 = vld [vmem:[#allocation3 + $0x88] sm:$0x3]  ;;  %v2483_v10 = vsel %vm835_vm4, %v2481_v60, %v2482_v7  ;;  %v2485_v33 = vsel %vm835_vm4, %v2482_v7, %v2484_v58 }
 0x330   : > { %1977 = vst.msk [vmem:[#allocation3 + $0xb1] sm:$0xff] %vm284_vm0, %v1816_v62  ;;  %v6987_v42 = vld [vmem:[#allocation3 + $0x78] sm:$0xff]  ;;  %v6989_v31 = vld [vmem:[#allocation3 + $0x80] sm:$0xff]  ;;  %v6997_v48 = vpack.c.bf16 %v2485_v33, %v2483_v10  ;;  %v2489_v56 = vrot.slane %v6984_v13, 2 }
 0x331   : > { %1976 = vst.msk [vmem:[#allocation3 + $0xa9] sm:$0xff] %vm284_vm0, %v1811_v41  ;;  %v4593_v1 = vpop.f32.mrb[16].mxu1  ;;  %v2486_v11 = vrot.slane %v6987_v42, 2  ;;  %v2487_v51 = vrot.slane %v6989_v31, 2 }
 0x332   : > { %v1826_v27 = vadd.f32 %v4593_v1, %v6763_v20  ;;  %v1820_v55 = vpop.f32.mrb[17].mxu1 }
 0x333   : > { %v1821_v61 = vadd.f32 %v6763_v20, %v1820_v55  ;;  %v7001_v29 = vld [vmem:[#allocation3 + $0xa0] sm:$0x3]  ;;  %v2488_v3 = vsel %vm835_vm4, %v2486_v11, %v2487_v51  ;;  %v2490_v25 = vsel %vm835_vm4, %v2487_v51, %v2489_v56  ;;  %v5053_v11 = vpack.c.bf16 %v6880_v26, %v6878_v53 }
 0x334   : > { %1979 = vst.msk [vmem:[#allocation3 + $0xc9] sm:$0xff] %vm284_vm0, %v1826_v27  ;;  %v7004_v22 = vld [vmem:[#allocation3 + $0x90] sm:$0xff]  ;;  %v7006_v24 = vld [vmem:[#allocation3 + $0x98] sm:$0xff]  ;;  %v7014_v5 = vpack.c.bf16 %v2490_v25, %v2488_v3  ;;  %v2494_v6 = vrot.slane %v7001_v29, 2  ;;  %v2241_v51 = vsel %vm476_vm2, %v2239_v4, %v2240_v0  ;;  %v2243_v56 = vsel %vm476_vm2, %v2240_v0, %v2242_v35 }
 0x335   : > { %1978 = vst.msk [vmem:[#allocation3 + $0xc1] sm:$0xff] %vm284_vm0, %v1821_v61  ;;  %v4596_v28 = vpop.f32.mrb[18].mxu1  ;;  %v2491_v44 = vrot.slane %v7004_v22, 2  ;;  %v2492_v49 = vrot.slane %v7006_v24, 2  ;;  %v2245_v53 = vrot.slane %v6925_v43, 1 }
 0x336   : > { %v1836_v14 = vadd.f32 %v4596_v28, %v6763_v20  ;;  %v1830_v16 = vpop.f32.mrb[19].mxu1  ;;  %v2244_v28 = vrot.slane %v6923_v12, 1 }
 0x337   : > { %v1831_v47 = vadd.f32 %v6763_v20, %v1830_v16  ;;  %v7021_v63 = vld [vmem:[#allocation3 + $0xb8] sm:$0x3]  ;;  %v2493_v62 = vsel %vm835_vm4, %v2491_v44, %v2492_v49  ;;  %v2495_v39 = vsel %vm835_vm4, %v2492_v49, %v2494_v6  ;;  %v2247_v6 = vrot.slane %v6920_v38, 1 }
 0x338   : > { %1981 = vst.msk [vmem:[#allocation3 + $0xe1] sm:$0xff] %vm284_vm0, %v1836_v14  ;;  %v7024_v8 = vld [vmem:[#allocation3 + $0xa8] sm:$0xff]  ;;  %v7026_v60 = vld [vmem:[#allocation3 + $0xb0] sm:$0xff]  ;;  %v7034_v33 = vpack.c.bf16 %v2495_v39, %v2493_v62  ;;  %v2499_v1 = vrot.slane %v7021_v63, 2 }
 0x339   : > { %1980 = vst.msk [vmem:[#allocation3 + $0xd9] sm:$0xff] %vm284_vm0, %v1831_v47  ;;  %v4599_v7 = vpop.f32.mrb[20].mxu1  ;;  %v2496_v58 = vrot.slane %v7024_v8, 2  ;;  %v2497_v10 = vrot.slane %v7026_v60, 2  ;;  %v5101_v47 = vpack.c.bf16 %v2243_v56, %v2241_v51 }
 0x33a   : > { %v1846_v41 = vadd.f32 %v4599_v7, %v6763_v20  ;;  %v1840_v19 = vpop.f32.mrb[21].mxu1 }
 0x33b   : > { %v1841_v27 = vadd.f32 %v6763_v20, %v1840_v19  ;;  %v7040_v55 = vld [vmem:[#allocation3 + $0xd0] sm:$0x3]  ;;  %v2498_v26 = vsel %vm835_vm4, %v2496_v58, %v2497_v10  ;;  %v2500_v35 = vsel %vm835_vm4, %v2497_v10, %v2499_v1 }
 0x33c   : > { %v7044_v61 = vld [vmem:[#allocation3 + $0xc0] sm:$0xff]  ;;  %v7046_v3 = vld [vmem:[#allocation3 + $0xc8] sm:$0xff]  ;;  %1983 = vst.msk [vmem:[#allocation3 + $0xf9] sm:$0xff] %vm284_vm0, %v1846_v41  ;;  %v2282_v25 = vrot.slane %v7040_v55, 1  ;;  %v7071_v41 = vpack.c.bf16 %v2500_v35, %v2498_v26 }
 0x33d   : > { %v7055_v44 = vpack.c.bf16 %v7046_v3, %v7044_v61  ;;  %v2279_v14 = vrot.slane %v7044_v61, 1  ;;  %v2280_v16 = vrot.slane %v7046_v3, 1  ;;  %1982 = vst.msk [vmem:[#allocation3 + $0xf1] sm:$0xff] %vm284_vm0, %v1841_v27  ;;  %v4602_v49 = vpop.f32.mrb[22].mxu1  ;;  %v2246_v27 = vsel %vm476_vm2, %v2244_v28, %v2245_v53 }
 0x33e   : > { %v1856_v4 = vadd.f32 %v4602_v49, %v6763_v20  ;;  %v1850_v0 = vpop.f32.mrb[23].mxu1 }
 0x33f   : > { %7975 = vst [vmem:[#allocation42_spill] sm:$0xff] %v7055_v44  ;;  %5052 = vmatprep.subr.msk.bf16.mxu1 %vm5783_vm3, %v7055_v44  ;;  %v2281_v62 = vsel %vm476_vm2, %v2279_v14, %v2280_v16  ;;  %v2283_v39 = vsel %vm476_vm2, %v2280_v16, %v2282_v25  ;;  %v1851_v7 = vadd.f32 %v6763_v20, %v1850_v0  ;;  %v7069_v58 = vld [vmem:[#allocation3 + $0xe8] sm:$0x3] }
 0x340   : > { %5055 = vmatpush3.bf16.xpose.msk.msra.mxu1 %vm5783_vm3, %v5053_v11  ;;  %v7075_v38 = vpack.c.bf16 %v2283_v39, %v2281_v62  ;;  %v7077_v19 = vld [vmem:[#allocation3 + $0xd8] sm:$0xff]  ;;  %v7079_v10 = vld [vmem:[#allocation3 + $0xe0] sm:$0xff]  ;;  %1985 = vst.msk [vmem:[#allocation3 + $0x111] sm:$0xff] %vm284_vm0, %v1856_v4  ;;  %v2287_v1 = vrot.slane %v7069_v58, 1  ;;  %v2248_v25 = vsel %vm476_vm2, %v2245_v53, %v2247_v6  ;;  %v7106_v4 = vpack.c.bf16 %v6925_v43, %v6923_v12 }
 0x341   : > { %v7086_v51 = vpack.c.bf16 %v7079_v10, %v7077_v19  ;;  %v2284_v56 = vrot.slane %v7077_v19, 1  ;;  %v2285_v11 = vrot.slane %v7079_v10, 1  ;;  %1984 = vst.msk [vmem:[#allocation3 + $0x109] sm:$0xff] %vm284_vm0, %v1851_v7  ;;  %v4605_v26 = vpop.f32.mrb[24].mxu1  ;;  %v7110_v35 = vpack.c.bf16 %v2248_v25, %v2246_v27 }
 0x342   : > { %7976 = vst [vmem:[#allocation43_spill] sm:$0xff] %v7075_v38  ;;  %5100 = vmatprep.subr.msk.bf16.mxu0 %vm5783_vm3, %v7075_v38  ;;  %v1866_v14 = vadd.f32 %v4605_v26, %v6763_v20  ;;  %v1860_v28 = vpop.f32.mrb[25].mxu1  ;;  %7977 = vst [vmem:[#allocation44_spill] sm:$0xff] %v7106_v4  ;;  %v2252_v43 = vrot.slane %v6933_v21, 1 }
 0x343   : > { %5103 = vmatpush3.bf16.xpose.msk.msra.mxu0 %vm5783_vm3, %v5101_v47  ;;  %5058 = vmatprep.subr.msk.bf16.mxu1 %vm5783_vm3, %v7086_v51  ;;  %v2286_v16 = vsel %vm476_vm2, %v2284_v56, %v2285_v11  ;;  %v2288_v49 = vsel %vm476_vm2, %v2285_v11, %v2287_v1  ;;  %v1861_v53 = vadd.f32 %v6763_v20, %v1860_v28  ;;  %v2028_v6 = vld [vmem:[#allocation3 + $0x100] sm:$0x3]  ;;  %v2249_v28 = vrot.slane %v6936_v57, 1 }
 0x344   : > { %v7108_v0 = vpack.c.bf16 %v2288_v49, %v2286_v16  ;;  %7979 = vst [vmem:[#allocation46_spill] sm:$0xff] %v7110_v35  ;;  %v2026_v47 = vld [vmem:[#allocation3 + $0xf0] sm:$0xff]  ;;  %v2027_v62 = vld [vmem:[#allocation3 + $0xf8] sm:$0xff]  ;;  %1987 = vst.msk [vmem:[#allocation3 + $0x129] sm:$0xff] %vm284_vm0, %v1866_v14  ;;  %v2292_v39 = vrot.slane %v2028_v6, 1  ;;  %v2514_v14 = vrot.slane %v2028_v6, 2 }
 0x345   : > { %v7113_v7 = vpack.c.bf16 %v2027_v62, %v2026_v47  ;;  %v2289_v56 = vrot.slane %v2026_v47, 1  ;;  %v2290_v1 = vrot.slane %v2027_v62, 1  ;;  %v2511_v11 = vrot.slane %v2026_v47, 2  ;;  %1986 = vst.msk [vmem:[#allocation3 + $0x121] sm:$0xff] %vm284_vm0, %v1861_v53  ;;  %v4608_v26 = vpop.f32.mrb[26].mxu1 }
 0x346   : > { %7978 = vst [vmem:[#allocation45_spill] sm:$0xff] %v7108_v0  ;;  %5106 = vmatprep.subr.msk.bf16.mxu0 %vm5783_vm3, %v7108_v0  ;;  %v2512_v12 = vrot.slane %v2027_v62, 2  ;;  %v1876_v27 = vadd.f32 %v4608_v26, %v6763_v20  ;;  %v1870_v25 = vpop.f32.mrb[27].mxu1  ;;  %v2250_v62 = vrot.slane %v6938_v23, 1 }
 0x347   : > { %7980 = vst [vmem:[#allocation47_spill] sm:$0xff] %v7113_v7  ;;  %v2291_v16 = vsel %vm476_vm2, %v2289_v56, %v2290_v1  ;;  %v2293_v49 = vsel %vm476_vm2, %v2290_v1, %v2292_v39  ;;  %v1871_v53 = vadd.f32 %v6763_v20, %v1870_v25  ;;  %v2031_v47 = vld [vmem:[#allocation3 + $0x118] sm:$0x3] }
 0x348   : > { %5061 = vmatpush3.bf16.xpose.msk.msra.mxu1 %vm5783_vm3, %v7106_v4  ;;  %v7129_v21 = vpack.c.bf16 %v2293_v49, %v2291_v16  ;;  %v2029_v26 = vld [vmem:[#allocation3 + $0x108] sm:$0xff]  ;;  %v2030_v46 = vld [vmem:[#allocation3 + $0x110] sm:$0xff]  ;;  %1989 = vst.msk [vmem:[#allocation3 + $0x141] sm:$0xff] %vm284_vm0, %v1876_v27  ;;  %v2513_v6 = vsel %vm835_vm4, %v2511_v11, %v2512_v12  ;;  %v2515_v56 = vsel %vm835_vm4, %v2512_v12, %v2514_v14  ;;  %v2297_v2 = vrot.slane %v2031_v47, 1 }
 0x349   : > { %5064 = vmatprep.subr.msk.bf16.mxu1 %vm5783_vm3, %v7113_v7  ;;  %v2294_v39 = vrot.slane %v2029_v26, 1  ;;  %v2295_v1 = vrot.slane %v2030_v46, 1  ;;  %v2516_v25 = vrot.slane %v2029_v26, 2  ;;  %1988 = vst.msk [vmem:[#allocation3 + $0x139] sm:$0xff] %vm284_vm0, %v1871_v53  ;;  %v4611_v16 = vpop.f32.mrb[28].mxu1  ;;  %v2517_v49 = vrot.slane %v2030_v46, 2 }
 0x34a   : > { %7981 = vst [vmem:[#allocation48_spill] sm:$0xff] %v7129_v21  ;;  %v1886_v59 = vadd.f32 %v4611_v16, %v6763_v20  ;;  %v1880_v38 = vpop.f32.mrb[29].mxu1  ;;  %v7139_v27 = vpack.c.bf16 %v2515_v56, %v2513_v6  ;;  %v2519_v11 = vrot.slane %v2031_v47, 2  ;;  %v7146_v12 = vpack.c.bf16 %v6938_v23, %v6936_v57 }
 0x34b   : > { %5109 = vmatpush3.bf16.xpose.msk.msra.mxu0 %vm5783_vm3, %v7110_v35  ;;  %v1881_v14 = vadd.f32 %v6763_v20, %v1880_v38  ;;  %v2034_v53 = vld [vmem:[#allocation3 + $0x130] sm:$0x3]  ;;  %v2251_v16 = vsel %vm476_vm2, %v2249_v28, %v2250_v62  ;;  %v2253_v6 = vsel %vm476_vm2, %v2250_v62, %v2252_v43  ;;  %v2518_v35 = vsel %vm835_vm4, %v2516_v25, %v2517_v49 }
 0x34c   : > { %7982 = vst [vmem:[#allocation49_spill] sm:$0xff] %v7146_v12  ;;  %5112 = vmatprep.subr.msk.bf16.mxu0 %vm5783_vm3, %v7129_v21  ;;  %v2032_v47 = vld [vmem:[#allocation3 + $0x120] sm:$0xff]  ;;  %v2033_v56 = vld [vmem:[#allocation3 + $0x128] sm:$0xff]  ;;  %1991 = vst.msk [vmem:[#allocation3 + $0x159] sm:$0xff] %vm284_vm0, %v1886_v59  ;;  %v2520_v57 = vsel %vm835_vm4, %v2517_v49, %v2519_v11  ;;  %v7157_v23 = vpack.c.bf16 %v2030_v46, %v2029_v26  ;;  %v2296_v38 = vsel %vm476_vm2, %v2294_v39, %v2295_v1 }
 0x34d   : > { %v2298_v0 = vsel %vm476_vm2, %v2295_v1, %v2297_v2  ;;  %v2521_v44 = vrot.slane %v2032_v47, 2  ;;  %1990 = vst.msk [vmem:[#allocation3 + $0x151] sm:$0xff] %vm284_vm0, %v1881_v14  ;;  %v4614_v28 = vpop.f32.mrb[30].mxu1  ;;  %v2522_v21 = vrot.slane %v2033_v56, 2  ;;  %v7163_v7 = vpack.c.bf16 %v2520_v57, %v2518_v35 }
 0x34e   : > { %7983 = vst [vmem:[#allocation50_spill] sm:$0xff] %v7157_v23  ;;  %v1896_v43 = vadd.f32 %v4614_v28, %v6763_v20  ;;  %v1890_v62 = vpop.f32.mrb[31].mxu1  ;;  %v2524_v59 = vrot.slane %v2034_v53, 2  ;;  %v7165_v25 = vpack.c.bf16 %v2253_v6, %v2251_v16  ;;  %v2254_v46 = vrot.slane %v6953_v34, 1 }
 0x34f   : > { %v2257_v26 = vrot.slane %v6950_v30, 1  ;;  %v1891_v39 = vadd.f32 %v6763_v20, %v1890_v62  ;;  %v2037_v2 = vld [vmem:[#allocation3 + $0x148] sm:$0x3]  ;;  %v2255_v1 = vrot.slane %v6955_v32, 1  ;;  %v7174_v49 = vpack.c.bf16 %v2298_v0, %v2296_v38 }
 0x350   : > { %7984 = vst [vmem:[#allocation51_spill] sm:$0xff] %v7165_v25  ;;  %5067 = vmatpush3.bf16.xpose.msk.msra.mxu1 %vm5783_vm3, %v7146_v12  ;;  %v2035_v35 = vld [vmem:[#allocation3 + $0x138] sm:$0xff]  ;;  %v2036_v11 = vld [vmem:[#allocation3 + $0x140] sm:$0xff]  ;;  %1993 = vst.msk [vmem:[#allocation3 + $0x171] sm:$0xff] %vm284_vm0, %v1896_v43  ;;  %v2523_v14 = vsel %vm835_vm4, %v2521_v44, %v2522_v21  ;;  %v2525_v16 = vsel %vm835_vm4, %v2522_v21, %v2524_v59  ;;  %v2299_v30 = vrot.slane %v2032_v47, 1  ;;  %v2300_v6 = vrot.slane %v2033_v56, 1 }
 0x351   : > { %7985 = vst [vmem:[#allocation53_spill] sm:$0xff] %v7174_v49  ;;  %5070 = vmatprep.subr.msk.bf16.mxu1 %vm5783_vm3, %v7157_v23  ;;  %v2302_v57 = vrot.slane %v2034_v53, 1  ;;  %v2526_v28 = vrot.slane %v2035_v35, 2  ;;  %1992 = vst.msk [vmem:[#allocation3 + $0x169] sm:$0xff] %vm284_vm0, %v1891_v39  ;;  %v2527_v0 = vrot.slane %v2036_v11, 2  ;;  %v7183_v38 = vpack.c.bf16 %v2525_v16, %v2523_v14 }
 0x352   : > { %v2529_v62 = vrot.slane %v2037_v2, 2  ;;  %v2256_v21 = vsel %vm476_vm2, %v2254_v46, %v2255_v1  ;;  %v2258_v53 = vsel %vm476_vm2, %v2255_v1, %v2257_v26  ;;  %v7195_v16 = vpack.c.bf16 %v2033_v56, %v2032_v47 }
 0x353   : > { %5115 = vmatpush3.bf16.xpose.msk.msra.mxu0 %vm5783_vm3, %v7165_v25  ;;  %v2040_v44 = vld [vmem:[#allocation3 + $0x160] sm:$0x3]  ;;  %v2528_v39 = vsel %vm835_vm4, %v2526_v28, %v2527_v0  ;;  %v2301_v23 = vsel %vm476_vm2, %v2299_v30, %v2300_v6  ;;  %v2303_v25 = vsel %vm476_vm2, %v2300_v6, %v2302_v57  ;;  %v7205_v1 = vpack.c.bf16 %v2258_v53, %v2256_v21 }
 0x354   : > { %5118 = vmatprep.subr.msk.bf16.mxu0 %vm5783_vm3, %v7174_v49  ;;  %v2038_v43 = vld [vmem:[#allocation3 + $0x150] sm:$0xff]  ;;  %v2039_v59 = vld [vmem:[#allocation3 + $0x158] sm:$0xff]  ;;  %v2530_v14 = vsel %vm835_vm4, %v2527_v0, %v2529_v62  ;;  %v7201_v49 = vpack.c.bf16 %v6955_v32, %v6953_v34  ;;  %v2534_v26 = vrot.slane %v2040_v44, 2  ;;  %v2262_v28 = vrot.slane %v6967_v9, 1 }
 0x355   : > { %v2531_v12 = vrot.slane %v2038_v43, 2  ;;  %v2532_v46 = vrot.slane %v2039_v59, 2  ;;  %v7203_v4 = vpack.c.bf16 %v2530_v14, %v2528_v39  ;;  %7986 = vst [vmem:[#allocation54_spill] sm:$0xff] %v7205_v1  ;;  %v2259_v47 = vrot.slane %v6970_v17, 1 }
 0x356   : > { %v7214_v56 = vpack.c.bf16 %v2303_v25, %v2301_v23  ;;  %v2304_v9 = vrot.slane %v2035_v35, 1  ;;  %v2305_v57 = vrot.slane %v2036_v11, 1  ;;  %v2307_v62 = vrot.slane %v2037_v2, 1 }
 0x357   : > { %v7208_v0 = vld [vmem:[#allocation3 + $0x178] sm:$0x3]  ;;  %v2533_v30 = vsel %vm835_vm4, %v2531_v12, %v2532_v46  ;;  %v2535_v6 = vsel %vm835_vm4, %v2532_v46, %v2534_v26  ;;  %v2260_v53 = vrot.slane %v6972_v18, 1  ;;  %v7233_v2 = vpack.c.bf16 %v2036_v11, %v2035_v35 }
 0x358   : > { %5073 = vmatpush3.bf16.xpose.msk.msra.mxu1 %vm5783_vm3, %v7201_v49  ;;  %7987 = vst [vmem:[#allocation55_spill] sm:$0xff] %v7214_v56  ;;  %v2041_v34 = vld [vmem:[#allocation3 + $0x168] sm:$0xff]  ;;  %v2042_v32 = vld [vmem:[#allocation3 + $0x170] sm:$0xff]  ;;  %v7222_v14 = vpack.c.bf16 %v2535_v6, %v2533_v30  ;;  %v2539_v23 = vrot.slane %v7208_v0, 2  ;;  %v2306_v46 = vsel %vm476_vm2, %v2304_v9, %v2305_v57  ;;  %v2308_v26 = vsel %vm476_vm2, %v2305_v57, %v2307_v62 }
 0x359   : > { %5076 = vmatprep.subr.msk.bf16.mxu1 %vm5783_vm3, %v7195_v16  ;;  %v2536_v21 = vrot.slane %v2041_v34, 2  ;;  %v2537_v39 = vrot.slane %v2042_v32, 2  ;;  %v7241_v6 = vpack.c.bf16 %v6972_v18, %v6970_v17  ;;  %v7248_v35 = vpack.c.bf16 %v2308_v26, %v2306_v46 }
 0x35a   : > { %v2309_v9 = vrot.slane %v2038_v43, 1  ;;  %v2310_v57 = vrot.slane %v2039_v59, 1  ;;  %v2312_v17 = vrot.slane %v2040_v44, 1  ;;  %v2264_v18 = vrot.slane %v6987_v42, 1 }
 0x35b   : > { %5121 = vmatpush3.bf16.xpose.msk.msra.mxu0 %vm5783_vm3, %v7205_v1  ;;  %v2538_v12 = vsel %vm835_vm4, %v2536_v21, %v2537_v39  ;;  %v2540_v25 = vsel %vm835_vm4, %v2537_v39, %v2539_v23  ;;  %v2261_v1 = vsel %vm476_vm2, %v2259_v47, %v2260_v53  ;;  %v2265_v47 = vrot.slane %v6989_v31, 1 }
 0x35c   : > { %5124 = vmatprep.subr.msk.bf16.mxu0 %vm5783_vm3, %v7214_v56  ;;  %v7237_v30 = vpack.c.bf16 %v2540_v25, %v2538_v12  ;;  %v2263_v56 = vsel %vm476_vm2, %v2260_v53, %v2262_v28  ;;  %v2267_v28 = vrot.slane %v6984_v13, 1  ;;  %v2313_v44 = vsel %vm476_vm2, %v2310_v57, %v2312_v17  ;;  %v4617_v25 = vpop.f32.mrb[32].mxu1 }
 0x35d   : > { %v7250_v11 = vpack.c.bf16 %v2263_v56, %v2261_v1  ;;  %v7264_v1 = vpack.c.bf16 %v2039_v59, %v2038_v43  ;;  %v2311_v56 = vsel %vm476_vm2, %v2309_v9, %v2310_v57  ;;  %v7270_v62 = vpack.c.bf16 %v6989_v31, %v6987_v42  ;;  %v1900_v26 = vpop.f32.mrb[33].mxu1 }
 0x35e   : > { %v2266_v13 = vsel %vm476_vm2, %v2264_v18, %v2265_v47  ;;  %v2268_v21 = vsel %vm476_vm2, %v2265_v47, %v2267_v28  ;;  %v7277_v53 = vpack.c.bf16 %v2313_v44, %v2311_v56  ;;  %v2314_v59 = vrot.slane %v2041_v34, 1 }
 0x35f   : > { %v7279_v43 = vpack.c.bf16 %v2268_v21, %v2266_v13  ;;  %v2315_v39 = vrot.slane %v2042_v32, 1  ;;  %v2317_v42 = vrot.slane %v7208_v0, 1  ;;  %v2269_v31 = vrot.slane %v7004_v22, 1 }
 0x360   : > { %5079 = vmatpush3.bf16.xpose.msk.msra.mxu1 %vm5783_vm3, %v7241_v6  ;;  %v2270_v23 = vrot.slane %v7006_v24, 1  ;;  %v2272_v12 = vrot.slane %v7001_v29, 1  ;;  %v1906_v46 = vadd.f32 %v4617_v25, %v6763_v20  ;;  %v7295_v9 = vpack.c.bf16 %v2042_v32, %v2041_v34 }
 0x361   : > { %5082 = vmatprep.subr.msk.bf16.mxu1 %vm5783_vm3, %v7233_v2  ;;  %v2316_v0 = vsel %vm476_vm2, %v2314_v59, %v2315_v39  ;;  %v2318_v57 = vsel %vm476_vm2, %v2315_v39, %v2317_v42  ;;  %v1901_v29 = vadd.f32 %v6763_v20, %v1900_v26  ;;  %v7302_v17 = vpack.c.bf16 %v7006_v24, %v7004_v22 }
 0x362   : > { %v2271_v18 = vsel %vm476_vm2, %v2269_v31, %v2270_v23  ;;  %v2273_v47 = vsel %vm476_vm2, %v2270_v23, %v2272_v12  ;;  %1995 = vst.msk [vmem:[#allocation3 + $0x189] sm:$0xff] %vm284_vm0, %v1906_v46  ;;  %v7311_v34 = vpack.c.bf16 %v2318_v57, %v2316_v0  ;;  %v2274_v20 = vrot.slane %v7024_v8, 1 }
 0x363   : > { %5127 = vmatpush3.bf16.xpose.msk.msra.mxu0 %vm5783_vm3, %v7250_v11  ;;  %1994 = vst.msk [vmem:[#allocation3 + $0x181] sm:$0xff] %vm284_vm0, %v1901_v29  ;;  %v7313_v32 = vpack.c.bf16 %v2273_v47, %v2271_v18  ;;  %v2275_v22 = vrot.slane %v7026_v60, 1  ;;  %v2277_v24 = vrot.slane %v7021_v63, 1  ;;  %v2501_v28 = vrot.slane %v7044_v61, 2  ;;  %v7992_v47 = vld [vmem:[#allocation50_spill] sm:$0xff] }
 0x364   : > { %5130 = vmatprep.subr.msk.bf16.mxu0 %vm5783_vm3, %v7248_v35  ;;  %v2502_v56 = vrot.slane %v7046_v3, 2  ;;  %v2504_v44 = vrot.slane %v7040_v55, 2  ;;  %v7332_v13 = vpack.c.bf16 %v7026_v60, %v7024_v8  ;;  %v2506_v12 = vrot.slane %v7077_v19, 2 }
 0x365   : > { %v2276_v63 = vsel %vm476_vm2, %v2274_v20, %v2275_v22  ;;  %v2278_v61 = vsel %vm476_vm2, %v2275_v22, %v2277_v24  ;;  %v2507_v25 = vrot.slane %v7079_v10, 2  ;;  %v2509_v46 = vrot.slane %v7069_v58, 2  ;;  %v3681_v58 = vld [vmem:[%s7779_s4 + $0x10] sm:$0xff]  ;;  %v7994_v24 = vld [vmem:[#allocation45_spill] sm:$0xff] }
 0x366   : > { %v2503_v59 = vsel %vm835_vm4, %v2501_v28, %v2502_v56  ;;  %v2505_v55 = vsel %vm835_vm4, %v2502_v56, %v2504_v44  ;;  %v7347_v60 = vpack.c.bf16 %v2278_v61, %v2276_v63  ;;  %v7988_v18 = vpack.c.bf16 %v6900_v36, %v6897_v50  ;;  %v7990_v50 = vld [vmem:[#allocation47_spill] sm:$0xff]  ;;  %v7991_v36 = vld [vmem:[#allocation49_spill] sm:$0xff]  ;;  %v7993_v22 = vld [vmem:[#allocation42_spill] sm:$0xff] }
 0x367   : > { %v7351_v31 = vpack.c.bf16 %v2505_v55, %v2503_v59  ;;  %v2508_v19 = vsel %vm835_vm4, %v2506_v12, %v2507_v25  ;;  %v2510_v10 = vsel %vm835_vm4, %v2507_v25, %v2509_v46  ;;  %v3749_v28 = vld [vmem:[%s7779_s4 + $0x20] sm:$0xff]  ;;  %v7995_v56 = vld [vmem:[#allocation46_spill] sm:$0xff]  ;;  %v7997_v63 = vld [vmem:[#allocation51_spill] sm:$0xff] }
 0x368   : > { %5085 = vmatpush3.bf16.xpose.msk.msra.mxu1 %vm5783_vm3, %v7270_v62  ;;  %v7376_v29 = vpack.c.bf16 %v2510_v10, %v2508_v19  ;;  %v7996_v44 = vld [vmem:[#allocation48_spill] sm:$0xff]  ;;  %v7998_v61 = vld [vmem:[#allocation53_spill] sm:$0xff]  ;;  %v7999_v59 = vld [vmem:[#allocation54_spill] sm:$0xff] }
 0x369   : > { %5088 = vmatprep.subr.msk.bf16.mxu1 %vm5783_vm3, %v7264_v1  ;;  %v7349_v42 = vld [vmem:[#allocation3 + $0x190] sm:$0x3]  ;;  %v8000_v55 = vld [vmem:[#allocation55_spill] sm:$0xff] }
 0x36a   : > { %v7336_v21 = vld [vmem:[#allocation3 + $0x180] sm:$0xff]  ;;  %v7338_v3 = vld [vmem:[#allocation3 + $0x188] sm:$0xff]  ;;  %v2858_v23 = vrot.slane %v7349_v42, 2 }
 0x36b   : > { %5133 = vmatpush3.bf16.xpose.msk.msra.mxu0 %vm5783_vm3, %v7279_v43  ;;  %v2855_v39 = vrot.slane %v7336_v21, 2  ;;  %v2856_v8 = vrot.slane %v7338_v3, 2  ;;  %v7472_v20 = vpack.c.bf16 %v7338_v3, %v7336_v21 }
 0x36c   : > { %5136 = vmatprep.subr.msk.bf16.mxu0 %vm5783_vm3, %v7277_v53 }
 0x36d   : > { %v2857_v26 = vsel %vm835_vm4, %v2855_v39, %v2856_v8  ;;  %v2859_v0 = vsel %vm835_vm4, %v2856_v8, %v2858_v23  ;;  %v2768_v39 = vrot.slane %v7336_v21, 1  ;;  %v2769_v8 = vrot.slane %v7338_v3, 1  ;;  %v8001_v21 = vld [vmem:[#allocation43_spill] sm:$0xff]  ;;  %v3783_v3 = vld [vmem:[%s7779_s4 + $0x28] sm:$0xff] }
 0x36e   : > { %v7365_v57 = vpack.c.bf16 %v2859_v0, %v2857_v26  ;;  %v2771_v23 = vrot.slane %v7349_v42, 1  ;;  %v8002_v26 = vld [vmem:[#allocation10_spill] sm:$0xff] }
 0x36f   : > { %v2770_v12 = vsel %vm476_vm2, %v2768_v39, %v2769_v8 }
 0x370   : > { %5091 = vmatpush3.bf16.xpose.msk.msra.mxu1 %vm5783_vm3, %v7302_v17  ;;  %v2772_v25 = vsel %vm476_vm2, %v2769_v8, %v2771_v23 }
 0x371   : > { %5094 = vmatprep.subr.msk.bf16.mxu1 %vm5783_vm3, %v7295_v9  ;;  %v7532_v46 = vpack.c.bf16 %v2772_v25, %v2770_v12 }
 0x373   : > { %5139 = vmatpush3.bf16.xpose.msk.msra.mxu0 %vm5783_vm3, %v7313_v32 }
 0x374   : > { %5142 = vmatprep.subr.msk.bf16.mxu0 %vm5783_vm3, %v7311_v34 }
 0x378   : > { %5097 = vmatpush3.bf16.xpose.msk.msra.mxu1 %vm5783_vm3, %v7332_v13 }
 0x37b   : > { %5145 = vmatpush3.bf16.xpose.msk.msra.mxu0 %vm5783_vm3, %v7347_v60 }
 0x37c   : > { %5148 = vmatprep.subr.msk.bf16.mxu0 %vm5783_vm3, %v7351_v31 }
 0x37f   : > { %4295 = vmatmul.mubr.msk.f32.vlgmr.msra.gmra.mrb[34].mxu1 %vm284_vm0, %v6876_v52  ;;  %v3715_v52 = vld [vmem:[%s7779_s4 + $0x18] sm:$0xff] }
 0x382   : > { %4329 = vmatmul.mubr.msk.f32.vlgmr.msra.gmra.mrb[2].mxu0 %vm284_vm0, %v6891_v54  ;;  %v7989_v54 = vld [vmem:[#allocation44_spill] sm:$0xff] }
 0x383   : > { %5151 = vmatpush3.bf16.xpose.msk.msra.mxu0 %vm5783_vm3, %v7988_v18  ;;  %4362 = vmatprep.mubr.msk.f32.mxu0 %vm284_vm0, %v3681_v58 }
 0x384   : > { %5154 = vmatprep.subr.msk.bf16.mxu0 %vm5783_vm3, %v7376_v29 }
 0x38b   : > { %5157 = vmatpush3.bf16.xpose.msk.msra.mxu0 %vm5783_vm3, %v6946_v45 }
 0x38c   : > { %5160 = vmatprep.subr.msk.bf16.mxu0 %vm5783_vm3, %v7139_v27 }
 0x393   : > { %5163 = vmatpush3.bf16.xpose.msk.msra.mxu0 %vm5783_vm3, %v6963_v15 }
 0x394   : > { %5166 = vmatprep.subr.msk.bf16.mxu0 %vm5783_vm3, %v7163_v7 }
 0x39b   : > { %5169 = vmatpush3.bf16.xpose.msk.msra.mxu0 %vm5783_vm3, %v6980_v40 }
 0x39c   : > { %5172 = vmatprep.subr.msk.bf16.mxu0 %vm5783_vm3, %v7183_v38 }
 0x3a3   : > { %5175 = vmatpush3.bf16.xpose.msk.msra.mxu0 %vm5783_vm3, %v6997_v48 }
 0x3a4   : > { %5178 = vmatprep.subr.msk.bf16.mxu0 %vm5783_vm3, %v7203_v4 }
 0x3ab   : > { %5181 = vmatpush3.bf16.xpose.msk.msra.mxu0 %vm5783_vm3, %v7014_v5 }
 0x3ac   : > { %5184 = vmatprep.subr.msk.bf16.mxu0 %vm5783_vm3, %v7222_v14 }
 0x3b3   : > { %5187 = vmatpush3.bf16.xpose.msk.msra.mxu0 %vm5783_vm3, %v7034_v33 }
 0x3b4   : > { %5190 = vmatprep.subr.msk.bf16.mxu0 %vm5783_vm3, %v7237_v30 }
 0x3bb   : > { %5193 = vmatpush3.bf16.xpose.msk.msra.mxu0 %vm5783_vm3, %v7071_v41 }
 0x3bc   : > { %5196 = vmatprep.subr.msk.bf16.mxu0 %vm5783_vm3, %v7086_v51 }
 0x3c2   : > { %4363 = vmatmul.mubr.msk.f32.vlgmr.msra.gmra.mrb[2].mxu0 %vm284_vm0, %v3681_v58  ;;  %v3817_v58 = vld [vmem:[%s7779_s4 + $0x30] sm:$0xff] }
 0x3c3   : > { %5199 = vmatpush3.bf16.xpose.msk.msra.mxu0 %vm5783_vm3, %v7989_v54  ;;  %4396 = vmatprep.mubr.msk.f32.mxu0 %vm284_vm0, %v3715_v52  ;;  %v3201_v54 = vld [vmem:[%s7780_s5] sm:$0xff] }
 0x3c4   : > { %5202 = vmatprep.subr.msk.bf16.mxu0 %vm5783_vm3, %v7990_v50 }
 0x3cb   : > { %5205 = vmatpush3.bf16.xpose.msk.msra.mxu0 %vm5783_vm3, %v7991_v36 }
 0x3cc   : > { %5208 = vmatprep.subr.msk.bf16.mxu0 %vm5783_vm3, %v7992_v47 }
 0x3d3   : > { %5211 = vmatpush3.bf16.xpose.msk.msra.mxu0 %vm5783_vm3, %v7201_v49 }
 0x3d4   : > { %5214 = vmatprep.subr.msk.bf16.mxu0 %vm5783_vm3, %v7195_v16 }
 0x3db   : > { %5217 = vmatpush3.bf16.xpose.msk.msra.mxu0 %vm5783_vm3, %v7241_v6 }
 0x3dc   : > { %5220 = vmatprep.subr.msk.bf16.mxu0 %vm5783_vm3, %v7233_v2 }
 0x3e3   : > { %5223 = vmatpush3.bf16.xpose.msk.msra.mxu0 %vm5783_vm3, %v7270_v62 }
 0x3e4   : > { %5226 = vmatprep.subr.msk.bf16.mxu0 %vm5783_vm3, %v7264_v1 }
 0x3eb   : > { %5229 = vmatpush3.bf16.xpose.msk.msra.mxu0 %vm5783_vm3, %v7302_v17 }
 0x3ec   : > { %5232 = vmatprep.subr.msk.bf16.mxu0 %vm5783_vm3, %v7295_v9 }
 0x3f3   : > { %5235 = vmatpush3.bf16.xpose.msk.msra.mxu0 %vm5783_vm3, %v7332_v13 }
 0x3f4   : > { %5238 = vmatprep.subr.msk.bf16.mxu0 %vm5783_vm3, %v7472_v20 }
 0x3fb   : > { %5241 = vmatpush3.bf16.xpose.msk.msra.mxu0 %vm5783_vm3, %v7993_v22 }
 0x3fc   : > { %5244 = vmatprep.subr.msk.bf16.mxu0 %vm5783_vm3, %v7994_v24 }
 0x402   : > { %4397 = vmatmul.mubr.msk.f32.vlgmr.msra.gmra.mrb[2].mxu0 %vm284_vm0, %v3715_v52  ;;  %v3851_v52 = vld [vmem:[%s7779_s4 + $0x38] sm:$0xff] }
 0x403   : > { %5247 = vmatpush3.bf16.xpose.msk.msra.mxu0 %vm5783_vm3, %v7995_v56  ;;  %4430 = vmatprep.mubr.msk.f32.mxu0 %vm284_vm0, %v3749_v28 }
 0x404   : > { %5250 = vmatprep.subr.msk.bf16.mxu0 %vm5783_vm3, %v7996_v44 }
 0x40b   : > { %5253 = vmatpush3.bf16.xpose.msk.msra.mxu0 %vm5783_vm3, %v7997_v63 }
 0x40c   : > { %5256 = vmatprep.subr.msk.bf16.mxu0 %vm5783_vm3, %v7998_v61 }
 0x413   : > { %5259 = vmatpush3.bf16.xpose.msk.msra.mxu0 %vm5783_vm3, %v7999_v59 }
 0x414   : > { %5262 = vmatprep.subr.msk.bf16.mxu0 %vm5783_vm3, %v8000_v55 }
 0x41b   : > { %5265 = vmatpush3.bf16.xpose.msk.msra.mxu0 %vm5783_vm3, %v7250_v11 }
 0x41c   : > { %5268 = vmatprep.subr.msk.bf16.mxu0 %vm5783_vm3, %v7248_v35 }
 0x423   : > { %5271 = vmatpush3.bf16.xpose.msk.msra.mxu0 %vm5783_vm3, %v7279_v43 }
 0x424   : > { %5274 = vmatprep.subr.msk.bf16.mxu0 %vm5783_vm3, %v7277_v53 }
 0x42b   : > { %5277 = vmatpush3.bf16.xpose.msk.msra.mxu0 %vm5783_vm3, %v7313_v32 }
 0x42c   : > { %5280 = vmatprep.subr.msk.bf16.mxu0 %vm5783_vm3, %v7311_v34 }
 0x433   : > { %5283 = vmatpush3.bf16.xpose.msk.msra.mxu0 %vm5783_vm3, %v7347_v60 }
 0x434   : > { %5286 = vmatprep.subr.msk.bf16.mxu0 %vm5783_vm3, %v7532_v46 }
 0x43b   : > { %5289 = vmatpush3.bf16.xpose.msk.msra.mxu0 %vm5783_vm3, %v8001_v21 }
 0x43c   : > { %5292 = vmatprep.subr.msk.bf16.mxu0 %vm5783_vm3, %v7376_v29 }
 0x442   : > { %4431 = vmatmul.mubr.msk.f32.vlgmr.msra.gmra.mrb[2].mxu0 %vm284_vm0, %v3749_v28 }
 0x443   : > { %5295 = vmatpush3.bf16.xpose.msk.msra.mxu0 %vm5783_vm3, %v6946_v45  ;;  %4464 = vmatprep.mubr.msk.f32.mxu0 %vm284_vm0, %v3783_v3  ;;  %v8003_v45 = vld [vmem:[#allocation25_spill] sm:$0xff] }
 0x444   : > { %5298 = vmatprep.subr.msk.bf16.mxu0 %vm5783_vm3, %v7139_v27 }
 0x44b   : > { %5301 = vmatpush3.bf16.xpose.msk.msra.mxu0 %vm5783_vm3, %v6963_v15 }
 0x44c   : > { %5304 = vmatprep.subr.msk.bf16.mxu0 %vm5783_vm3, %v7163_v7 }
 0x452   : > { %v2216_v42 = vpop.f32.mrb[34].mxu1 }
 0x453   : > { %v7564_v0 = vadd.f32 %v8002_v26, %v2216_v42  ;;  %v2218_v19 = vpop.f32.mrb[35].mxu1  ;;  %5307 = vmatpush3.bf16.xpose.msk.msra.mxu0 %vm5783_vm3, %v6980_v40 }
 0x454   : > { %v7570_v10 = vadd.f32 %v8003_v45, %v2218_v19  ;;  %5310 = vmatprep.subr.msk.bf16.mxu0 %vm5783_vm3, %v7183_v38 }
 0x45b   : > { %5313 = vmatpush3.bf16.xpose.msk.msra.mxu0 %vm5783_vm3, %v6997_v48 }
 0x45c   : > { %5316 = vmatprep.subr.msk.bf16.mxu0 %vm5783_vm3, %v7203_v4 }
 0x463   : > { %5319 = vmatpush3.bf16.xpose.msk.msra.mxu0 %vm5783_vm3, %v7014_v5 }
 0x464   : > { %5322 = vmatprep.subr.msk.bf16.mxu0 %vm5783_vm3, %v7222_v14 }
 0x46b   : > { %5325 = vmatpush3.bf16.xpose.msk.msra.mxu0 %vm5783_vm3, %v7034_v33 }
 0x46c   : > { %5328 = vmatprep.subr.msk.bf16.mxu0 %vm5783_vm3, %v7237_v30 }
 0x473   : > { %5331 = vmatpush3.bf16.xpose.msk.msra.mxu0 %vm5783_vm3, %v7071_v41 }
 0x474   : > { %5334 = vmatprep.subr.msk.bf16.mxu0 %vm5783_vm3, %v7365_v57 }
 0x47b   : > { %5337 = vmatpush3.bf16.xpose.msk.msra.mxu0 %vm5783_vm3, %v7351_v31 }
 0x47c   : > { %5340 = vmatprep.subr.msk.bf16.mxu0 %vm5783_vm3, %v7990_v50 }
 0x482   : > { %4465 = vmatmul.mubr.msk.f32.vlgmr.msra.gmra.mrb[2].mxu0 %vm284_vm0, %v3783_v3 }
 0x483   : > { %5343 = vmatpush3.bf16.xpose.msk.msra.mxu0 %vm5783_vm3, %v7991_v36  ;;  %4498 = vmatprep.mubr.msk.f32.mxu0 %vm284_vm0, %v3817_v58 }
 0x484   : > { %5346 = vmatprep.subr.msk.bf16.mxu0 %vm5783_vm3, %v7992_v47 }
 0x48b   : > { %5349 = vmatpush3.bf16.xpose.msk.msra.mxu0 %vm5783_vm3, %v7201_v49  ;;  %v2047_v49 = vld [vmem:[#allocation3 + $0x198] sm:$0xff] }
 0x48c   : > { %5352 = vmatprep.subr.msk.bf16.mxu0 %vm5783_vm3, %v7195_v16  ;;  %v2048_v16 = vld [vmem:[#allocation3 + $0x1a0] sm:$0xff] }
 0x48d   : > { %v3028_v50 = vrot.slane %v2048_v16, 1 }
 0x493   : > { %5355 = vmatpush3.bf16.xpose.msk.msra.mxu0 %vm5783_vm3, %v7241_v6  ;;  %v3115_v6 = vrot.slane %v2048_v16, 2 }
 0x494   : > { %5358 = vmatprep.subr.msk.bf16.mxu0 %vm5783_vm3, %v7233_v2  ;;  %v3114_v2 = vrot.slane %v2047_v49, 2 }
 0x49b   : > { %5361 = vmatpush3.bf16.xpose.msk.msra.mxu0 %vm5783_vm3, %v7270_v62  ;;  %v2049_v62 = vld [vmem:[#allocation3 + $0x1a8] sm:$0x3] }
 0x49c   : > { %5364 = vmatprep.subr.msk.bf16.mxu0 %vm5783_vm3, %v7264_v1  ;;  %v5380_v1 = vpack.c.bf16 %v2048_v16, %v2047_v49  ;;  %v3030_v36 = vrot.slane %v2049_v62, 1 }
 0x4a3   : > { %5367 = vmatpush3.bf16.xpose.msk.msra.mxu0 %vm5783_vm3, %v7302_v17  ;;  %v3117_v17 = vrot.slane %v2049_v62, 2 }
 0x4a4   : > { %5370 = vmatprep.subr.msk.bf16.mxu0 %vm5783_vm3, %v7295_v9  ;;  %v3116_v9 = vsel %vm835_vm4, %v3114_v2, %v3115_v6 }
 0x4ab   : > { %5373 = vmatpush3.bf16.xpose.msk.msra.mxu0 %vm5783_vm3, %v7332_v13  ;;  %v3118_v13 = vsel %vm835_vm4, %v3115_v6, %v3117_v17 }
 0x4ac   : > { %5376 = vmatprep.subr.msk.bf16.mxu0 %vm5783_vm3, %v7472_v20  ;;  %v5476_v18 = vpack.c.bf16 %v3118_v13, %v3116_v9 }
 0x4b3   : > { %5379 = vmatpush3.bf16.xpose.msk.msra.mxu0 %vm5783_vm3, %v7993_v22 }
 0x4b4   : > { %5382 = vmatprep.subr.msk.bf16.mxu0 %vm5783_vm3, %v5380_v1 }
 0x4bb   : > { %5385 = vmatpush3.bf16.xpose.msk.msra.mxu0 %vm5783_vm3, %v7086_v51  ;;  %v5536_v51 = vmov 0  }
 0x4bc   : > { %5388 = vmatprep.subr.msk.bf16.mxu0 %vm5783_vm3, %v7996_v44  ;;  %5526 = vset.pattern.permute.xlu0 %v5536_v51 }
 0x4bd   : > { %3204 = vperm.xlu0 %5526, %v3201_v54  }
 0x4c2   : > { %4499 = vmatmul.mubr.msk.f32.vlgmr.msra.gmra.mrb[2].mxu0 %vm284_vm0, %v3817_v58 }
 0x4c3   : > { %5391 = vmatpush3.bf16.xpose.msk.msra.mxu0 %vm5783_vm3, %v7997_v63  ;;  %4532 = vmatprep.mubr.msk.f32.mxu0 %vm284_vm0, %v3851_v52 }
 0x4c4   : > { %5394 = vmatprep.subr.msk.bf16.mxu0 %vm5783_vm3, %v7998_v61 }
 0x4cb   : > { %5397 = vmatpush3.bf16.xpose.msk.msra.mxu0 %vm5783_vm3, %v7999_v59 }
 0x4cc   : > { %5400 = vmatprep.subr.msk.bf16.mxu0 %vm5783_vm3, %v8000_v55 }
 0x4d3   : > { %5403 = vmatpush3.bf16.xpose.msk.msra.mxu0 %vm5783_vm3, %v7250_v11  ;;  %v3027_v11 = vrot.slane %v2047_v49, 1 }
 0x4d4   : > { %5406 = vmatprep.subr.msk.bf16.mxu0 %vm5783_vm3, %v7248_v35 }
 0x4d5   : > { %v3029_v35 = vsel %vm476_vm2, %v3027_v11, %v3028_v50 }
 0x4db   : > { %5409 = vmatpush3.bf16.xpose.msk.msra.mxu0 %vm5783_vm3, %v7279_v43 }
 0x4dc   : > { %5412 = vmatprep.subr.msk.bf16.mxu0 %vm5783_vm3, %v7277_v53  ;;  %v3031_v53 = vsel %vm476_vm2, %v3028_v50, %v3030_v36 }
 0x4dd   : > { %v5428_v43 = vpack.c.bf16 %v3031_v53, %v3029_v35 }
 0x4e3   : > { %5415 = vmatpush3.bf16.xpose.msk.msra.mxu0 %vm5783_vm3, %v7313_v32 }
 0x4e4   : > { %5418 = vmatprep.subr.msk.bf16.mxu0 %vm5783_vm3, %v7311_v34  ;;  %v3885_v34 = vld [vmem:[%s7779_s4 + $0x40] sm:$0xff] }
 0x4eb   : > { %5421 = vmatpush3.bf16.xpose.msk.msra.mxu0 %vm5783_vm3, %v7347_v60 }
 0x4ec   : > { %5424 = vmatprep.subr.msk.bf16.mxu0 %vm5783_vm3, %v7532_v46 }
 0x4f3   : > { %5427 = vmatpush3.bf16.xpose.msk.msra.mxu0 %vm5783_vm3, %v8001_v21 }
 0x4f4   : > { %5430 = vmatprep.subr.msk.bf16.mxu0 %vm5783_vm3, %v5428_v43 }
 0x4fb   : > { %5433 = vmatpush3.bf16.xpose.msk.msra.mxu0 %vm5783_vm3, %v7994_v24 }
 0x4fc   : > { %5436 = vmatprep.subr.msk.bf16.mxu0 %vm5783_vm3, %v7139_v27 }
 0x502   : > { %4533 = vmatmul.mubr.msk.f32.vlgmr.msra.gmra.mrb[2].mxu0 %vm284_vm0, %v3851_v52 }
 0x503   : > { %5439 = vmatpush3.bf16.xpose.msk.msra.mxu0 %vm5783_vm3, %v6963_v15  ;;  %4566 = vmatprep.mubr.msk.f32.mxu0 %vm284_vm0, %v3885_v34 }
 0x504   : > { %5442 = vmatprep.subr.msk.bf16.mxu0 %vm5783_vm3, %v7163_v7 }
 0x50b   : > { %5445 = vmatpush3.bf16.xpose.msk.msra.mxu0 %vm5783_vm3, %v6980_v40 }
 0x50c   : > { %5448 = vmatprep.subr.msk.bf16.mxu0 %vm5783_vm3, %v7183_v38 }
 0x513   : > { %5451 = vmatpush3.bf16.xpose.msk.msra.mxu0 %vm5783_vm3, %v6997_v48 }
 0x514   : > { %5454 = vmatprep.subr.msk.bf16.mxu0 %vm5783_vm3, %v7203_v4 }
 0x51b   : > { %5457 = vmatpush3.bf16.xpose.msk.msra.mxu0 %vm5783_vm3, %v7014_v5 }
 0x51c   : > { %5460 = vmatprep.subr.msk.bf16.mxu0 %vm5783_vm3, %v7222_v14 }
 0x523   : > { %5463 = vmatpush3.bf16.xpose.msk.msra.mxu0 %vm5783_vm3, %v7034_v33 }
 0x524   : > { %5466 = vmatprep.subr.msk.bf16.mxu0 %vm5783_vm3, %v7237_v30 }
 0x52b   : > { %5469 = vmatpush3.bf16.xpose.msk.msra.mxu0 %vm5783_vm3, %v7071_v41 }
 0x52c   : > { %5472 = vmatprep.subr.msk.bf16.mxu0 %vm5783_vm3, %v7365_v57 }
 0x533   : > { %5475 = vmatpush3.bf16.xpose.msk.msra.mxu0 %vm5783_vm3, %v7351_v31 }
 0x534   : > { %5478 = vmatprep.subr.msk.bf16.mxu0 %vm5783_vm3, %v5476_v18 }
 0x53b   : > { %5481 = vmatpush3.bf16.xpose.msk.msra.mxu0 %vm5783_vm3, %v7376_v29 }
 0x53c   : > { %v3205_v40 = vpop.permute.xlu0 %3204 }
 0x542   : > { %4567 = vmatmul.mubr.msk.f32.vlgmr.msra.gmra.mrb[2].mxu0 %vm284_vm0, %v3885_v34 }
 0x615   : > { %v3194_v15 = vpop.f32.mrb[2].mxu0 }
 0x616   : > { %v5484_v48 = vadd.f32 %v7564_v0, %v3194_v15  ;;  %v3196_v5 = vpop.f32.mrb[3].mxu0 }
 0x617   : > { %v5487_v33 = vadd.f32 %v7570_v10, %v3196_v5 }
 0x618   : > { %v3207_v41 = vadd.f32 %v5484_v48, %v3205_v40 }
 0x619   : > { %v3208_v4 = vadd.f32 %v5487_v33, %v3205_v40 }
 0x61a   : > { %3209 = vst [vmem:[%s251_s29] sm:$0xff] %v3207_v41 }
 0x61b   : > { %3210 = vst [vmem:[%s251_s29 + $0x8] sm:$0xff] %v3208_v4 }
 0x61c PF: > { %s16_s21 = sadd.s32 1, %s5533_s21  }
 0x61d   : > { %p13_p4 = scmp.ge.s32.totalorder %s16_s21, 4  }
 0x61f   :  { %15 = sbr.rel (!%p13_p4) target bundleno = 1 (0x1), region = 92 }

</bundles_post_ra>
